<compile_context>
chip_gen: v7x
topology: tpu7x:2x2x1
jax: 0.10.0
libtpu: 0.0.40
codegen_flags: <defaults>
</compile_context>

<pallas_src>
import functools

import jax
import jax.numpy as jnp
from jax import lax
from jax.experimental import pallas as pl
from jax.experimental.pallas import tpu as pltpu

K = 7          # conv kernel size
PAD = K // 2   # padding = 3


def _sam_kernel(w_ref, widx_ref, x_ref, o_ref, *, C, H, W, BT, bf16_apply):
    """One block of BT batch elements, lane-dense layout.

    w_ref    : SMEM (2*K*K,) f32   -- flattened conv weight (out=1, in=2, 7, 7)
    widx_ref : VMEM (1, H*W) i32   -- exact column index of each flattened position
    x_ref    : VMEM (BT, C, H*W)   -- input features (flattened spatial dims)
    o_ref    : VMEM (BT, C, H*W)   -- output features
    """
    HW = H * W
    f32 = jnp.float32

    # ---- channel pooling: one load of the block; max is exact in the source dtype ----
    xv = x_ref[...]
    mx = jnp.max(xv, axis=1).astype(f32)                        # (BT, HW)
    av = jnp.sum(xv.astype(f32), axis=1) * (1.0 / C)            # (BT, HW)
    pooled = (mx, av)

    # ---- exact index helpers for the conv edge masks (flattened h*W + w domain) ----
    p_idx = lax.broadcasted_iota(jnp.int32, (1, HW), 1)         # flat position (exact int)
    w_idx = widx_ref[...]                                       # column index (exact, host-built)

    # ---- hoisted column edge masks, shared by both pooled planes ----
    col_mask = {}
    for kj in range(K):
        dj = kj - PAD
        if dj > 0:
            col_mask[kj] = w_idx < (W - dj)
        elif dj < 0:
            col_mask[kj] = w_idx >= (-dj)

    # ---- 7x7 conv as shifted accumulates (rolls hit the XLU, off the VALU path) ----
    # 2*7 column-shifted-and-masked planes are built once; per row-offset ki we only
    # accumulate scalar-weighted planes, then do a single row roll + row mask (7 total).
    pre = [None] * K                                            # one plane per row offset ki
    for c in range(2):
        for kj in range(K):
            dj = kj - PAD
            v = pooled[c]
            if dj != 0:
                v = pltpu.roll(v, (-dj) % HW, axis=1)
                v = jnp.where(col_mask[kj], v, 0.0)
            base = c * K * K + kj
            for ki in range(K):
                t = w_ref[base + ki * K] * v                    # scalar weight from SMEM
                pre[ki] = t if pre[ki] is None else pre[ki] + t

    acc = None
    for ki in range(K):
        di = ki - PAD
        t = pre[ki]
        if di != 0:
            t = pltpu.roll(t, (-di * W) % HW, axis=1)
            if di > 0:
                t = jnp.where(p_idx < (H - di) * W, t, 0.0)
            else:
                t = jnp.where(p_idx >= (-di) * W, t, 0.0)
        acc = t if acc is None else acc + t

    # ---- fused epilogue: out = x * (1 + sigmoid(conv)); x re-read (low vreg pressure) ----
    scale = 1.0 + jax.nn.sigmoid(acc)                           # (BT, HW) f32
    xa = x_ref[...]
    if bf16_apply:
        # bf16 VALU path (v6e/v7x): one cast of the small scale map, no f32 round-trip
        # on the full block.
        o_ref[...] = (xa * scale.astype(o_ref.dtype)[:, None, :]).astype(o_ref.dtype)
    else:
        o_ref[...] = (xa.astype(f32) * scale[:, None, :]).astype(o_ref.dtype)


def sam_forward(x, conv_weight, *, block_batch=None, target_block_bytes=8 << 20,
                bf16_apply=None):
    """x: (B, C, H, W); conv_weight: (1, 2, 7, 7) (no bias)."""
    B, C, H, W = x.shape
    HW = H * W
    x2 = x.reshape(B, C, HW)                                    # lane-dense view
    w_flat = conv_weight.reshape(-1).astype(jnp.float32)        # (2*7*7,) -> SMEM prefetch

    # Exact column index of every flattened spatial position (integer math, host/XLA side).
    w_idx = (jnp.arange(HW, dtype=jnp.int32) % jnp.int32(W)).reshape(1, HW)

    # --- block-size heuristic (effective bytes include sublane padding of C) ---
    itemsize = jnp.dtype(x.dtype).itemsize
    sub = 8 * max(1, 4 // itemsize)                             # sublane pack: f32->8, bf16->16
    c_pad = ((C + sub - 1) // sub) * sub
    per_b = c_pad * HW * itemsize
    # TODO(synk): when C is not a multiple of the sublane pack, fold BT into the sublane
    # dim (view as (B*C, HW)) to avoid padded sublanes; typical CBAM C (>=32) is fine.

    if block_batch is None:
        bt = max(1, min(B, target_block_bytes // max(per_b, 1)))
        if B >= 2:
            bt = min(bt, B // 2)       # >= 2 grid steps so v7x's two TCs both get work
        bt = max(1, bt)
        while B % bt:
            bt -= 1
    else:
        bt = block_batch
    assert B % bt == 0

    # --- VMEM budget: in+out double-buffered + pooled-domain f32 temporaries + headroom ---
    block_bytes = bt * per_b
    temp_bytes = 12 * bt * HW * 4                               # pooled, 7 pre, acc, masks
    if itemsize < 4:
        temp_bytes += bt * c_pad * HW * 4                       # possible f32 block copy
    vmem_limit = 4 * block_bytes + temp_bytes + (4 << 20)
    vmem_limit = int(min(48 << 20, max(32 << 20, vmem_limit)))  # <=48 MiB (v7x has 64 MiB)
    # TODO(synk): if a single batch element's block overflows this budget (very large
    # C*H*W, esp. on v7x), add an H-tile grid axis with a 3-row halo for the 7x7 conv.

    if bf16_apply is None:
        try:
            kind = jax.devices()[0].device_kind.lower()
        except Exception:
            kind = ""
        bf16_apply = (x.dtype == jnp.bfloat16) and ("v5" not in kind)
    bf16_apply = bool(bf16_apply) and (x.dtype == jnp.bfloat16)

    kernel = functools.partial(_sam_kernel, C=C, H=H, W=W, BT=bt, bf16_apply=bf16_apply)
    out2 = pl.pallas_call(
        kernel,
        out_shape=jax.ShapeDtypeStruct((B, C, HW), x.dtype),
        grid_spec=pltpu.PrefetchScalarGridSpec(
            num_scalar_prefetch=1,                      # conv weights prefetched into SMEM
            grid=(B // bt,),
            in_specs=[pl.BlockSpec((1, HW), lambda b, w: (0, 0)),      # column indices
                      pl.BlockSpec((bt, C, HW), lambda b, w: (b, 0, 0))],
            out_specs=pl.BlockSpec((bt, C, HW), lambda b, w: (b, 0, 0)),
        ),
        compiler_params=pltpu.CompilerParams(
            dimension_semantics=("parallel",),
            vmem_limit_bytes=vmem_limit,
        ),
    )(w_flat, w_idx, x2)
    return out2.reshape(B, C, H, W)


def sam_reference(x, conv_weight):
    """Pure-JAX reference for correctness checking."""
    max_pool = jnp.max(x, axis=1, keepdims=True)
    avg_pool = jnp.mean(x, axis=1, keepdims=True)
    concat = jnp.concatenate([max_pool, avg_pool], axis=1)
    conv = lax.conv_general_dilated(
        concat, conv_weight, window_strides=(1, 1),
        padding=[(PAD, PAD), (PAD, PAD)],
        dimension_numbers=("NCHW", "OIHW", "NCHW"),
    )
    smap = jax.nn.sigmoid(conv)
    return x + smap * x


if __name__ == "__main__":
    key = jax.random.PRNGKey(0)
    kx, kw = jax.random.split(key)

    B, C, H, W = 2, 4, 16, 16
    x = jax.random.normal(kx, (B, C, H, W), dtype=jnp.float32)

    # Deterministic conv weight init (PyTorch Conv2d default: U(-1/sqrt(fan_in), +)).
    fan_in = 2 * K * K
    bound = 1.0 / (fan_in ** 0.5)
    conv_weight = jax.random.uniform(kw, (1, 2, K, K), jnp.float32, -bound, bound)
    # bias=False in the module -> no bias term.

    out = jax.block_until_ready(sam_forward(x, conv_weight))
    ref = sam_reference(x, conv_weight)

    assert out.shape == x.shape
    assert jnp.allclose(out, ref, atol=1e-5, rtol=1e-5), "mismatch vs reference"
    print("KERNEL_OK")
</pallas_src>

<mosaic_0001>
module attributes {stable_mosaic.version = 11 : i64} {
  func.func @_sam_kernel(%arg0: i32, %arg1: memref<98xf32, #tpu.memory_space<smem>>, %arg2: memref<1x256xi32, #tpu.memory_space<vmem>>, %arg3: memref<1x4x256xf32, #tpu.memory_space<vmem>>, %arg4: memref<1x4x256xf32, #tpu.memory_space<vmem>>) attributes {dimension_semantics = [#tpu.dimension_semantics<parallel>], iteration_bounds = array<i64: 2>, scalar_prefetch = 1 : i64, scratch_operands = 0 : i64, tpu.core_type = #tpu.core_type<tc>, window_params = [{pipeline_mode = #tpu.pipeline_mode<synchronous>, transform_indices = @transform_0, window_bounds = array<i64: 1, 256>}, {transform_indices = @transform_1, window_bounds = array<i64: 1, 4, 256>}, {transform_indices = @transform_2, window_bounds = array<i64: 1, 4, 256>}]} {
    %c0 = arith.constant 0 : index
    %c0_0 = arith.constant 0 : index
    %c0_1 = arith.constant 0 : index
    %0 = vector.load %arg3[%c0, %c0_0, %c0_1] : memref<1x4x256xf32, #tpu.memory_space<vmem>>, vector<1x4x256xf32>
    %cst = arith.constant dense<0xFF800000> : vector<1x256xf32>
    %1 = vector.multi_reduction <maximumf>, %0, %cst [1] : vector<1x4x256xf32> to vector<1x256xf32>
    %cst_2 = arith.constant dense<0.000000e+00> : vector<1x256xf32>
    %2 = vector.multi_reduction <add>, %0, %cst_2 [1] : vector<1x4x256xf32> to vector<1x256xf32>
    %cst_3 = arith.constant 2.500000e-01 : f32
    %3 = vector.broadcast %cst_3 : f32 to vector<1x256xf32>
    %4 = arith.mulf %2, %3 : vector<1x256xf32>
    %5 = tpu.iota {dimensions = array<i32: 1>} : vector<1x256xi32>
    %c0_4 = arith.constant 0 : index
    %c0_5 = arith.constant 0 : index
    %6 = vector.load %arg2[%c0_4, %c0_5] : memref<1x256xi32, #tpu.memory_space<vmem>>, vector<1x256xi32>
    %c3_i32 = arith.constant 3 : i32
    %7 = vector.broadcast %c3_i32 : i32 to vector<1x256xi32>
    %8 = arith.cmpi sge, %6, %7 : vector<1x256xi32>
    %c2_i32 = arith.constant 2 : i32
    %9 = vector.broadcast %c2_i32 : i32 to vector<1x256xi32>
    %10 = arith.cmpi sge, %6, %9 : vector<1x256xi32>
    %c1_i32 = arith.constant 1 : i32
    %11 = vector.broadcast %c1_i32 : i32 to vector<1x256xi32>
    %12 = arith.cmpi sge, %6, %11 : vector<1x256xi32>
    %c15_i32 = arith.constant 15 : i32
    %13 = vector.broadcast %c15_i32 : i32 to vector<1x256xi32>
    %14 = arith.cmpi slt, %6, %13 : vector<1x256xi32>
    %c14_i32 = arith.constant 14 : i32
    %15 = vector.broadcast %c14_i32 : i32 to vector<1x256xi32>
    %16 = arith.cmpi slt, %6, %15 : vector<1x256xi32>
    %c13_i32 = arith.constant 13 : i32
    %17 = vector.broadcast %c13_i32 : i32 to vector<1x256xi32>
    %18 = arith.cmpi slt, %6, %17 : vector<1x256xi32>
    %c3_i32_6 = arith.constant 3 : i32
    %19 = tpu.dynamic_rotate %1 by %c3_i32_6 dim 1 : vector<1x256xf32>, i32 -> vector<1x256xf32>
    %cst_7 = arith.constant 0.000000e+00 : f32
    %20 = vector.broadcast %cst_7 : f32 to vector<1x256xf32>
    %21 = arith.select %8, %19, %20 : vector<1x256xi1>, vector<1x256xf32>
    %c0_8 = arith.constant 0 : index
    %22 = memref.load %arg1[%c0_8] : memref<98xf32, #tpu.memory_space<smem>>
    %23 = vector.broadcast %22 : f32 to vector<1x256xf32>
    %24 = arith.mulf %23, %21 : vector<1x256xf32>
    %c7 = arith.constant 7 : index
    %25 = memref.load %arg1[%c7] : memref<98xf32, #tpu.memory_space<smem>>
    %26 = vector.broadcast %25 : f32 to vector<1x256xf32>
    %27 = arith.mulf %26, %21 : vector<1x256xf32>
    %c14 = arith.constant 14 : index
    %28 = memref.load %arg1[%c14] : memref<98xf32, #tpu.memory_space<smem>>
    %29 = vector.broadcast %28 : f32 to vector<1x256xf32>
    %30 = arith.mulf %29, %21 : vector<1x256xf32>
    %c21 = arith.constant 21 : index
    %31 = memref.load %arg1[%c21] : memref<98xf32, #tpu.memory_space<smem>>
    %32 = vector.broadcast %31 : f32 to vector<1x256xf32>
    %33 = arith.mulf %32, %21 : vector<1x256xf32>
    %c28 = arith.constant 28 : index
    %34 = memref.load %arg1[%c28] : memref<98xf32, #tpu.memory_space<smem>>
    %35 = vector.broadcast %34 : f32 to vector<1x256xf32>
    %36 = arith.mulf %35, %21 : vector<1x256xf32>
    %c35 = arith.constant 35 : index
    %37 = memref.load %arg1[%c35] : memref<98xf32, #tpu.memory_space<smem>>
    %38 = vector.broadcast %37 : f32 to vector<1x256xf32>
    %39 = arith.mulf %38, %21 : vector<1x256xf32>
    %c42 = arith.constant 42 : index
    %40 = memref.load %arg1[%c42] : memref<98xf32, #tpu.memory_space<smem>>
    %41 = vector.broadcast %40 : f32 to vector<1x256xf32>
    %42 = arith.mulf %41, %21 : vector<1x256xf32>
    %c2_i32_9 = arith.constant 2 : i32
    %43 = tpu.dynamic_rotate %1 by %c2_i32_9 dim 1 : vector<1x256xf32>, i32 -> vector<1x256xf32>
    %cst_10 = arith.constant 0.000000e+00 : f32
    %44 = vector.broadcast %cst_10 : f32 to vector<1x256xf32>
    %45 = arith.select %10, %43, %44 : vector<1x256xi1>, vector<1x256xf32>
    %c1 = arith.constant 1 : index
    %46 = memref.load %arg1[%c1] : memref<98xf32, #tpu.memory_space<smem>>
    %47 = vector.broadcast %46 : f32 to vector<1x256xf32>
    %48 = arith.mulf %47, %45 : vector<1x256xf32>
    %49 = arith.addf %24, %48 : vector<1x256xf32>
    %c8 = arith.constant 8 : index
    %50 = memref.load %arg1[%c8] : memref<98xf32, #tpu.memory_space<smem>>
    %51 = vector.broadcast %50 : f32 to vector<1x256xf32>
    %52 = arith.mulf %51, %45 : vector<1x256xf32>
    %53 = arith.addf %27, %52 : vector<1x256xf32>
    %c15 = arith.constant 15 : index
    %54 = memref.load %arg1[%c15] : memref<98xf32, #tpu.memory_space<smem>>
    %55 = vector.broadcast %54 : f32 to vector<1x256xf32>
    %56 = arith.mulf %55, %45 : vector<1x256xf32>
    %57 = arith.addf %30, %56 : vector<1x256xf32>
    %c22 = arith.constant 22 : index
    %58 = memref.load %arg1[%c22] : memref<98xf32, #tpu.memory_space<smem>>
    %59 = vector.broadcast %58 : f32 to vector<1x256xf32>
    %60 = arith.mulf %59, %45 : vector<1x256xf32>
    %61 = arith.addf %33, %60 : vector<1x256xf32>
    %c29 = arith.constant 29 : index
    %62 = memref.load %arg1[%c29] : memref<98xf32, #tpu.memory_space<smem>>
    %63 = vector.broadcast %62 : f32 to vector<1x256xf32>
    %64 = arith.mulf %63, %45 : vector<1x256xf32>
    %65 = arith.addf %36, %64 : vector<1x256xf32>
    %c36 = arith.constant 36 : index
    %66 = memref.load %arg1[%c36] : memref<98xf32, #tpu.memory_space<smem>>
    %67 = vector.broadcast %66 : f32 to vector<1x256xf32>
    %68 = arith.mulf %67, %45 : vector<1x256xf32>
    %69 = arith.addf %39, %68 : vector<1x256xf32>
    %c43 = arith.constant 43 : index
    %70 = memref.load %arg1[%c43] : memref<98xf32, #tpu.memory_space<smem>>
    %71 = vector.broadcast %70 : f32 to vector<1x256xf32>
    %72 = arith.mulf %71, %45 : vector<1x256xf32>
    %73 = arith.addf %42, %72 : vector<1x256xf32>
    %c1_i32_11 = arith.constant 1 : i32
    %74 = tpu.dynamic_rotate %1 by %c1_i32_11 dim 1 : vector<1x256xf32>, i32 -> vector<1x256xf32>
    %cst_12 = arith.constant 0.000000e+00 : f32
    %75 = vector.broadcast %cst_12 : f32 to vector<1x256xf32>
    %76 = arith.select %12, %74, %75 : vector<1x256xi1>, vector<1x256xf32>
    %c2 = arith.constant 2 : index
    %77 = memref.load %arg1[%c2] : memref<98xf32, #tpu.memory_space<smem>>
    %78 = vector.broadcast %77 : f32 to vector<1x256xf32>
    %79 = arith.mulf %78, %76 : vector<1x256xf32>
    %80 = arith.addf %49, %79 : vector<1x256xf32>
    %c9 = arith.constant 9 : index
    %81 = memref.load %arg1[%c9] : memref<98xf32, #tpu.memory_space<smem>>
    %82 = vector.broadcast %81 : f32 to vector<1x256xf32>
    %83 = arith.mulf %82, %76 : vector<1x256xf32>
    %84 = arith.addf %53, %83 : vector<1x256xf32>
    %c16 = arith.constant 16 : index
    %85 = memref.load %arg1[%c16] : memref<98xf32, #tpu.memory_space<smem>>
    %86 = vector.broadcast %85 : f32 to vector<1x256xf32>
    %87 = arith.mulf %86, %76 : vector<1x256xf32>
    %88 = arith.addf %57, %87 : vector<1x256xf32>
    %c23 = arith.constant 23 : index
    %89 = memref.load %arg1[%c23] : memref<98xf32, #tpu.memory_space<smem>>
    %90 = vector.broadcast %89 : f32 to vector<1x256xf32>
    %91 = arith.mulf %90, %76 : vector<1x256xf32>
    %92 = arith.addf %61, %91 : vector<1x256xf32>
    %c30 = arith.constant 30 : index
    %93 = memref.load %arg1[%c30] : memref<98xf32, #tpu.memory_space<smem>>
    %94 = vector.broadcast %93 : f32 to vector<1x256xf32>
    %95 = arith.mulf %94, %76 : vector<1x256xf32>
    %96 = arith.addf %65, %95 : vector<1x256xf32>
    %c37 = arith.constant 37 : index
    %97 = memref.load %arg1[%c37] : memref<98xf32, #tpu.memory_space<smem>>
    %98 = vector.broadcast %97 : f32 to vector<1x256xf32>
    %99 = arith.mulf %98, %76 : vector<1x256xf32>
    %100 = arith.addf %69, %99 : vector<1x256xf32>
    %c44 = arith.constant 44 : index
    %101 = memref.load %arg1[%c44] : memref<98xf32, #tpu.memory_space<smem>>
    %102 = vector.broadcast %101 : f32 to vector<1x256xf32>
    %103 = arith.mulf %102, %76 : vector<1x256xf32>
    %104 = arith.addf %73, %103 : vector<1x256xf32>
    %c3 = arith.constant 3 : index
    %105 = memref.load %arg1[%c3] : memref<98xf32, #tpu.memory_space<smem>>
    %106 = vector.broadcast %105 : f32 to vector<1x256xf32>
    %107 = arith.mulf %106, %1 : vector<1x256xf32>
    %108 = arith.addf %80, %107 : vector<1x256xf32>
    %c10 = arith.constant 10 : index
    %109 = memref.load %arg1[%c10] : memref<98xf32, #tpu.memory_space<smem>>
    %110 = vector.broadcast %109 : f32 to vector<1x256xf32>
    %111 = arith.mulf %110, %1 : vector<1x256xf32>
    %112 = arith.addf %84, %111 : vector<1x256xf32>
    %c17 = arith.constant 17 : index
    %113 = memref.load %arg1[%c17] : memref<98xf32, #tpu.memory_space<smem>>
    %114 = vector.broadcast %113 : f32 to vector<1x256xf32>
    %115 = arith.mulf %114, %1 : vector<1x256xf32>
    %116 = arith.addf %88, %115 : vector<1x256xf32>
    %c24 = arith.constant 24 : index
    %117 = memref.load %arg1[%c24] : memref<98xf32, #tpu.memory_space<smem>>
    %118 = vector.broadcast %117 : f32 to vector<1x256xf32>
    %119 = arith.mulf %118, %1 : vector<1x256xf32>
    %120 = arith.addf %92, %119 : vector<1x256xf32>
    %c31 = arith.constant 31 : index
    %121 = memref.load %arg1[%c31] : memref<98xf32, #tpu.memory_space<smem>>
    %122 = vector.broadcast %121 : f32 to vector<1x256xf32>
    %123 = arith.mulf %122, %1 : vector<1x256xf32>
    %124 = arith.addf %96, %123 : vector<1x256xf32>
    %c38 = arith.constant 38 : index
    %125 = memref.load %arg1[%c38] : memref<98xf32, #tpu.memory_space<smem>>
    %126 = vector.broadcast %125 : f32 to vector<1x256xf32>
    %127 = arith.mulf %126, %1 : vector<1x256xf32>
    %128 = arith.addf %100, %127 : vector<1x256xf32>
    %c45 = arith.constant 45 : index
    %129 = memref.load %arg1[%c45] : memref<98xf32, #tpu.memory_space<smem>>
    %130 = vector.broadcast %129 : f32 to vector<1x256xf32>
    %131 = arith.mulf %130, %1 : vector<1x256xf32>
    %132 = arith.addf %104, %131 : vector<1x256xf32>
    %c255_i32 = arith.constant 255 : i32
    %133 = tpu.dynamic_rotate %1 by %c255_i32 dim 1 : vector<1x256xf32>, i32 -> vector<1x256xf32>
    %cst_13 = arith.constant 0.000000e+00 : f32
    %134 = vector.broadcast %cst_13 : f32 to vector<1x256xf32>
    %135 = arith.select %14, %133, %134 : vector<1x256xi1>, vector<1x256xf32>
    %c4 = arith.constant 4 : index
    %136 = memref.load %arg1[%c4] : memref<98xf32, #tpu.memory_space<smem>>
    %137 = vector.broadcast %136 : f32 to vector<1x256xf32>
    %138 = arith.mulf %137, %135 : vector<1x256xf32>
    %139 = arith.addf %108, %138 : vector<1x256xf32>
    %c11 = arith.constant 11 : index
    %140 = memref.load %arg1[%c11] : memref<98xf32, #tpu.memory_space<smem>>
    %141 = vector.broadcast %140 : f32 to vector<1x256xf32>
    %142 = arith.mulf %141, %135 : vector<1x256xf32>
    %143 = arith.addf %112, %142 : vector<1x256xf32>
    %c18 = arith.constant 18 : index
    %144 = memref.load %arg1[%c18] : memref<98xf32, #tpu.memory_space<smem>>
    %145 = vector.broadcast %144 : f32 to vector<1x256xf32>
    %146 = arith.mulf %145, %135 : vector<1x256xf32>
    %147 = arith.addf %116, %146 : vector<1x256xf32>
    %c25 = arith.constant 25 : index
    %148 = memref.load %arg1[%c25] : memref<98xf32, #tpu.memory_space<smem>>
    %149 = vector.broadcast %148 : f32 to vector<1x256xf32>
    %150 = arith.mulf %149, %135 : vector<1x256xf32>
    %151 = arith.addf %120, %150 : vector<1x256xf32>
    %c32 = arith.constant 32 : index
    %152 = memref.load %arg1[%c32] : memref<98xf32, #tpu.memory_space<smem>>
    %153 = vector.broadcast %152 : f32 to vector<1x256xf32>
    %154 = arith.mulf %153, %135 : vector<1x256xf32>
    %155 = arith.addf %124, %154 : vector<1x256xf32>
    %c39 = arith.constant 39 : index
    %156 = memref.load %arg1[%c39] : memref<98xf32, #tpu.memory_space<smem>>
    %157 = vector.broadcast %156 : f32 to vector<1x256xf32>
    %158 = arith.mulf %157, %135 : vector<1x256xf32>
    %159 = arith.addf %128, %158 : vector<1x256xf32>
    %c46 = arith.constant 46 : index
    %160 = memref.load %arg1[%c46] : memref<98xf32, #tpu.memory_space<smem>>
    %161 = vector.broadcast %160 : f32 to vector<1x256xf32>
    %162 = arith.mulf %161, %135 : vector<1x256xf32>
    %163 = arith.addf %132, %162 : vector<1x256xf32>
    %c254_i32 = arith.constant 254 : i32
    %164 = tpu.dynamic_rotate %1 by %c254_i32 dim 1 : vector<1x256xf32>, i32 -> vector<1x256xf32>
    %cst_14 = arith.constant 0.000000e+00 : f32
    %165 = vector.broadcast %cst_14 : f32 to vector<1x256xf32>
    %166 = arith.select %16, %164, %165 : vector<1x256xi1>, vector<1x256xf32>
    %c5 = arith.constant 5 : index
    %167 = memref.load %arg1[%c5] : memref<98xf32, #tpu.memory_space<smem>>
    %168 = vector.broadcast %167 : f32 to vector<1x256xf32>
    %169 = arith.mulf %168, %166 : vector<1x256xf32>
    %170 = arith.addf %139, %169 : vector<1x256xf32>
    %c12 = arith.constant 12 : index
    %171 = memref.load %arg1[%c12] : memref<98xf32, #tpu.memory_space<smem>>
    %172 = vector.broadcast %171 : f32 to vector<1x256xf32>
    %173 = arith.mulf %172, %166 : vector<1x256xf32>
    %174 = arith.addf %143, %173 : vector<1x256xf32>
    %c19 = arith.constant 19 : index
    %175 = memref.load %arg1[%c19] : memref<98xf32, #tpu.memory_space<smem>>
    %176 = vector.broadcast %175 : f32 to vector<1x256xf32>
    %177 = arith.mulf %176, %166 : vector<1x256xf32>
    %178 = arith.addf %147, %177 : vector<1x256xf32>
    %c26 = arith.constant 26 : index
    %179 = memref.load %arg1[%c26] : memref<98xf32, #tpu.memory_space<smem>>
    %180 = vector.broadcast %179 : f32 to vector<1x256xf32>
    %181 = arith.mulf %180, %166 : vector<1x256xf32>
    %182 = arith.addf %151, %181 : vector<1x256xf32>
    %c33 = arith.constant 33 : index
    %183 = memref.load %arg1[%c33] : memref<98xf32, #tpu.memory_space<smem>>
    %184 = vector.broadcast %183 : f32 to vector<1x256xf32>
    %185 = arith.mulf %184, %166 : vector<1x256xf32>
    %186 = arith.addf %155, %185 : vector<1x256xf32>
    %c40 = arith.constant 40 : index
    %187 = memref.load %arg1[%c40] : memref<98xf32, #tpu.memory_space<smem>>
    %188 = vector.broadcast %187 : f32 to vector<1x256xf32>
    %189 = arith.mulf %188, %166 : vector<1x256xf32>
    %190 = arith.addf %159, %189 : vector<1x256xf32>
    %c47 = arith.constant 47 : index
    %191 = memref.load %arg1[%c47] : memref<98xf32, #tpu.memory_space<smem>>
    %192 = vector.broadcast %191 : f32 to vector<1x256xf32>
    %193 = arith.mulf %192, %166 : vector<1x256xf32>
    %194 = arith.addf %163, %193 : vector<1x256xf32>
    %c253_i32 = arith.constant 253 : i32
    %195 = tpu.dynamic_rotate %1 by %c253_i32 dim 1 : vector<1x256xf32>, i32 -> vector<1x256xf32>
    %cst_15 = arith.constant 0.000000e+00 : f32
    %196 = vector.broadcast %cst_15 : f32 to vector<1x256xf32>
    %197 = arith.select %18, %195, %196 : vector<1x256xi1>, vector<1x256xf32>
    %c6 = arith.constant 6 : index
    %198 = memref.load %arg1[%c6] : memref<98xf32, #tpu.memory_space<smem>>
    %199 = vector.broadcast %198 : f32 to vector<1x256xf32>
    %200 = arith.mulf %199, %197 : vector<1x256xf32>
    %201 = arith.addf %170, %200 : vector<1x256xf32>
    %c13 = arith.constant 13 : index
    %202 = memref.load %arg1[%c13] : memref<98xf32, #tpu.memory_space<smem>>
    %203 = vector.broadcast %202 : f32 to vector<1x256xf32>
    %204 = arith.mulf %203, %197 : vector<1x256xf32>
    %205 = arith.addf %174, %204 : vector<1x256xf32>
    %c20 = arith.constant 20 : index
    %206 = memref.load %arg1[%c20] : memref<98xf32, #tpu.memory_space<smem>>
    %207 = vector.broadcast %206 : f32 to vector<1x256xf32>
    %208 = arith.mulf %207, %197 : vector<1x256xf32>
    %209 = arith.addf %178, %208 : vector<1x256xf32>
    %c27 = arith.constant 27 : index
    %210 = memref.load %arg1[%c27] : memref<98xf32, #tpu.memory_space<smem>>
    %211 = vector.broadcast %210 : f32 to vector<1x256xf32>
    %212 = arith.mulf %211, %197 : vector<1x256xf32>
    %213 = arith.addf %182, %212 : vector<1x256xf32>
    %c34 = arith.constant 34 : index
    %214 = memref.load %arg1[%c34] : memref<98xf32, #tpu.memory_space<smem>>
    %215 = vector.broadcast %214 : f32 to vector<1x256xf32>
    %216 = arith.mulf %215, %197 : vector<1x256xf32>
    %217 = arith.addf %186, %216 : vector<1x256xf32>
    %c41 = arith.constant 41 : index
    %218 = memref.load %arg1[%c41] : memref<98xf32, #tpu.memory_space<smem>>
    %219 = vector.broadcast %218 : f32 to vector<1x256xf32>
    %220 = arith.mulf %219, %197 : vector<1x256xf32>
    %221 = arith.addf %190, %220 : vector<1x256xf32>
    %c48 = arith.constant 48 : index
    %222 = memref.load %arg1[%c48] : memref<98xf32, #tpu.memory_space<smem>>
    %223 = vector.broadcast %222 : f32 to vector<1x256xf32>
    %224 = arith.mulf %223, %197 : vector<1x256xf32>
    %225 = arith.addf %194, %224 : vector<1x256xf32>
    %c3_i32_16 = arith.constant 3 : i32
    %226 = tpu.dynamic_rotate %4 by %c3_i32_16 dim 1 : vector<1x256xf32>, i32 -> vector<1x256xf32>
    %cst_17 = arith.constant 0.000000e+00 : f32
    %227 = vector.broadcast %cst_17 : f32 to vector<1x256xf32>
    %228 = arith.select %8, %226, %227 : vector<1x256xi1>, vector<1x256xf32>
    %c49 = arith.constant 49 : index
    %229 = memref.load %arg1[%c49] : memref<98xf32, #tpu.memory_space<smem>>
    %230 = vector.broadcast %229 : f32 to vector<1x256xf32>
    %231 = arith.mulf %230, %228 : vector<1x256xf32>
    %232 = arith.addf %201, %231 : vector<1x256xf32>
    %c56 = arith.constant 56 : index
    %233 = memref.load %arg1[%c56] : memref<98xf32, #tpu.memory_space<smem>>
    %234 = vector.broadcast %233 : f32 to vector<1x256xf32>
    %235 = arith.mulf %234, %228 : vector<1x256xf32>
    %236 = arith.addf %205, %235 : vector<1x256xf32>
    %c63 = arith.constant 63 : index
    %237 = memref.load %arg1[%c63] : memref<98xf32, #tpu.memory_space<smem>>
    %238 = vector.broadcast %237 : f32 to vector<1x256xf32>
    %239 = arith.mulf %238, %228 : vector<1x256xf32>
    %240 = arith.addf %209, %239 : vector<1x256xf32>
    %c70 = arith.constant 70 : index
    %241 = memref.load %arg1[%c70] : memref<98xf32, #tpu.memory_space<smem>>
    %242 = vector.broadcast %241 : f32 to vector<1x256xf32>
    %243 = arith.mulf %242, %228 : vector<1x256xf32>
    %244 = arith.addf %213, %243 : vector<1x256xf32>
    %c77 = arith.constant 77 : index
    %245 = memref.load %arg1[%c77] : memref<98xf32, #tpu.memory_space<smem>>
    %246 = vector.broadcast %245 : f32 to vector<1x256xf32>
    %247 = arith.mulf %246, %228 : vector<1x256xf32>
    %248 = arith.addf %217, %247 : vector<1x256xf32>
    %c84 = arith.constant 84 : index
    %249 = memref.load %arg1[%c84] : memref<98xf32, #tpu.memory_space<smem>>
    %250 = vector.broadcast %249 : f32 to vector<1x256xf32>
    %251 = arith.mulf %250, %228 : vector<1x256xf32>
    %252 = arith.addf %221, %251 : vector<1x256xf32>
    %c91 = arith.constant 91 : index
    %253 = memref.load %arg1[%c91] : memref<98xf32, #tpu.memory_space<smem>>
    %254 = vector.broadcast %253 : f32 to vector<1x256xf32>
    %255 = arith.mulf %254, %228 : vector<1x256xf32>
    %256 = arith.addf %225, %255 : vector<1x256xf32>
    %c2_i32_18 = arith.constant 2 : i32
    %257 = tpu.dynamic_rotate %4 by %c2_i32_18 dim 1 : vector<1x256xf32>, i32 -> vector<1x256xf32>
    %cst_19 = arith.constant 0.000000e+00 : f32
    %258 = vector.broadcast %cst_19 : f32 to vector<1x256xf32>
    %259 = arith.select %10, %257, %258 : vector<1x256xi1>, vector<1x256xf32>
    %c50 = arith.constant 50 : index
    %260 = memref.load %arg1[%c50] : memref<98xf32, #tpu.memory_space<smem>>
    %261 = vector.broadcast %260 : f32 to vector<1x256xf32>
    %262 = arith.mulf %261, %259 : vector<1x256xf32>
    %263 = arith.addf %232, %262 : vector<1x256xf32>
    %c57 = arith.constant 57 : index
    %264 = memref.load %arg1[%c57] : memref<98xf32, #tpu.memory_space<smem>>
    %265 = vector.broadcast %264 : f32 to vector<1x256xf32>
    %266 = arith.mulf %265, %259 : vector<1x256xf32>
    %267 = arith.addf %236, %266 : vector<1x256xf32>
    %c64 = arith.constant 64 : index
    %268 = memref.load %arg1[%c64] : memref<98xf32, #tpu.memory_space<smem>>
    %269 = vector.broadcast %268 : f32 to vector<1x256xf32>
    %270 = arith.mulf %269, %259 : vector<1x256xf32>
    %271 = arith.addf %240, %270 : vector<1x256xf32>
    %c71 = arith.constant 71 : index
    %272 = memref.load %arg1[%c71] : memref<98xf32, #tpu.memory_space<smem>>
    %273 = vector.broadcast %272 : f32 to vector<1x256xf32>
    %274 = arith.mulf %273, %259 : vector<1x256xf32>
    %275 = arith.addf %244, %274 : vector<1x256xf32>
    %c78 = arith.constant 78 : index
    %276 = memref.load %arg1[%c78] : memref<98xf32, #tpu.memory_space<smem>>
    %277 = vector.broadcast %276 : f32 to vector<1x256xf32>
    %278 = arith.mulf %277, %259 : vector<1x256xf32>
    %279 = arith.addf %248, %278 : vector<1x256xf32>
    %c85 = arith.constant 85 : index
    %280 = memref.load %arg1[%c85] : memref<98xf32, #tpu.memory_space<smem>>
    %281 = vector.broadcast %280 : f32 to vector<1x256xf32>
    %282 = arith.mulf %281, %259 : vector<1x256xf32>
    %283 = arith.addf %252, %282 : vector<1x256xf32>
    %c92 = arith.constant 92 : index
    %284 = memref.load %arg1[%c92] : memref<98xf32, #tpu.memory_space<smem>>
    %285 = vector.broadcast %284 : f32 to vector<1x256xf32>
    %286 = arith.mulf %285, %259 : vector<1x256xf32>
    %287 = arith.addf %256, %286 : vector<1x256xf32>
    %c1_i32_20 = arith.constant 1 : i32
    %288 = tpu.dynamic_rotate %4 by %c1_i32_20 dim 1 : vector<1x256xf32>, i32 -> vector<1x256xf32>
    %cst_21 = arith.constant 0.000000e+00 : f32
    %289 = vector.broadcast %cst_21 : f32 to vector<1x256xf32>
    %290 = arith.select %12, %288, %289 : vector<1x256xi1>, vector<1x256xf32>
    %c51 = arith.constant 51 : index
    %291 = memref.load %arg1[%c51] : memref<98xf32, #tpu.memory_space<smem>>
    %292 = vector.broadcast %291 : f32 to vector<1x256xf32>
    %293 = arith.mulf %292, %290 : vector<1x256xf32>
    %294 = arith.addf %263, %293 : vector<1x256xf32>
    %c58 = arith.constant 58 : index
    %295 = memref.load %arg1[%c58] : memref<98xf32, #tpu.memory_space<smem>>
    %296 = vector.broadcast %295 : f32 to vector<1x256xf32>
    %297 = arith.mulf %296, %290 : vector<1x256xf32>
    %298 = arith.addf %267, %297 : vector<1x256xf32>
    %c65 = arith.constant 65 : index
    %299 = memref.load %arg1[%c65] : memref<98xf32, #tpu.memory_space<smem>>
    %300 = vector.broadcast %299 : f32 to vector<1x256xf32>
    %301 = arith.mulf %300, %290 : vector<1x256xf32>
    %302 = arith.addf %271, %301 : vector<1x256xf32>
    %c72 = arith.constant 72 : index
    %303 = memref.load %arg1[%c72] : memref<98xf32, #tpu.memory_space<smem>>
    %304 = vector.broadcast %303 : f32 to vector<1x256xf32>
    %305 = arith.mulf %304, %290 : vector<1x256xf32>
    %306 = arith.addf %275, %305 : vector<1x256xf32>
    %c79 = arith.constant 79 : index
    %307 = memref.load %arg1[%c79] : memref<98xf32, #tpu.memory_space<smem>>
    %308 = vector.broadcast %307 : f32 to vector<1x256xf32>
    %309 = arith.mulf %308, %290 : vector<1x256xf32>
    %310 = arith.addf %279, %309 : vector<1x256xf32>
    %c86 = arith.constant 86 : index
    %311 = memref.load %arg1[%c86] : memref<98xf32, #tpu.memory_space<smem>>
    %312 = vector.broadcast %311 : f32 to vector<1x256xf32>
    %313 = arith.mulf %312, %290 : vector<1x256xf32>
    %314 = arith.addf %283, %313 : vector<1x256xf32>
    %c93 = arith.constant 93 : index
    %315 = memref.load %arg1[%c93] : memref<98xf32, #tpu.memory_space<smem>>
    %316 = vector.broadcast %315 : f32 to vector<1x256xf32>
    %317 = arith.mulf %316, %290 : vector<1x256xf32>
    %318 = arith.addf %287, %317 : vector<1x256xf32>
    %c52 = arith.constant 52 : index
    %319 = memref.load %arg1[%c52] : memref<98xf32, #tpu.memory_space<smem>>
    %320 = vector.broadcast %319 : f32 to vector<1x256xf32>
    %321 = arith.mulf %320, %4 : vector<1x256xf32>
    %322 = arith.addf %294, %321 : vector<1x256xf32>
    %c59 = arith.constant 59 : index
    %323 = memref.load %arg1[%c59] : memref<98xf32, #tpu.memory_space<smem>>
    %324 = vector.broadcast %323 : f32 to vector<1x256xf32>
    %325 = arith.mulf %324, %4 : vector<1x256xf32>
    %326 = arith.addf %298, %325 : vector<1x256xf32>
    %c66 = arith.constant 66 : index
    %327 = memref.load %arg1[%c66] : memref<98xf32, #tpu.memory_space<smem>>
    %328 = vector.broadcast %327 : f32 to vector<1x256xf32>
    %329 = arith.mulf %328, %4 : vector<1x256xf32>
    %330 = arith.addf %302, %329 : vector<1x256xf32>
    %c73 = arith.constant 73 : index
    %331 = memref.load %arg1[%c73] : memref<98xf32, #tpu.memory_space<smem>>
    %332 = vector.broadcast %331 : f32 to vector<1x256xf32>
    %333 = arith.mulf %332, %4 : vector<1x256xf32>
    %334 = arith.addf %306, %333 : vector<1x256xf32>
    %c80 = arith.constant 80 : index
    %335 = memref.load %arg1[%c80] : memref<98xf32, #tpu.memory_space<smem>>
    %336 = vector.broadcast %335 : f32 to vector<1x256xf32>
    %337 = arith.mulf %336, %4 : vector<1x256xf32>
    %338 = arith.addf %310, %337 : vector<1x256xf32>
    %c87 = arith.constant 87 : index
    %339 = memref.load %arg1[%c87] : memref<98xf32, #tpu.memory_space<smem>>
    %340 = vector.broadcast %339 : f32 to vector<1x256xf32>
    %341 = arith.mulf %340, %4 : vector<1x256xf32>
    %342 = arith.addf %314, %341 : vector<1x256xf32>
    %c94 = arith.constant 94 : index
    %343 = memref.load %arg1[%c94] : memref<98xf32, #tpu.memory_space<smem>>
    %344 = vector.broadcast %343 : f32 to vector<1x256xf32>
    %345 = arith.mulf %344, %4 : vector<1x256xf32>
    %346 = arith.addf %318, %345 : vector<1x256xf32>
    %c255_i32_22 = arith.constant 255 : i32
    %347 = tpu.dynamic_rotate %4 by %c255_i32_22 dim 1 : vector<1x256xf32>, i32 -> vector<1x256xf32>
    %cst_23 = arith.constant 0.000000e+00 : f32
    %348 = vector.broadcast %cst_23 : f32 to vector<1x256xf32>
    %349 = arith.select %14, %347, %348 : vector<1x256xi1>, vector<1x256xf32>
    %c53 = arith.constant 53 : index
    %350 = memref.load %arg1[%c53] : memref<98xf32, #tpu.memory_space<smem>>
    %351 = vector.broadcast %350 : f32 to vector<1x256xf32>
    %352 = arith.mulf %351, %349 : vector<1x256xf32>
    %353 = arith.addf %322, %352 : vector<1x256xf32>
    %c60 = arith.constant 60 : index
    %354 = memref.load %arg1[%c60] : memref<98xf32, #tpu.memory_space<smem>>
    %355 = vector.broadcast %354 : f32 to vector<1x256xf32>
    %356 = arith.mulf %355, %349 : vector<1x256xf32>
    %357 = arith.addf %326, %356 : vector<1x256xf32>
    %c67 = arith.constant 67 : index
    %358 = memref.load %arg1[%c67] : memref<98xf32, #tpu.memory_space<smem>>
    %359 = vector.broadcast %358 : f32 to vector<1x256xf32>
    %360 = arith.mulf %359, %349 : vector<1x256xf32>
    %361 = arith.addf %330, %360 : vector<1x256xf32>
    %c74 = arith.constant 74 : index
    %362 = memref.load %arg1[%c74] : memref<98xf32, #tpu.memory_space<smem>>
    %363 = vector.broadcast %362 : f32 to vector<1x256xf32>
    %364 = arith.mulf %363, %349 : vector<1x256xf32>
    %365 = arith.addf %334, %364 : vector<1x256xf32>
    %c81 = arith.constant 81 : index
    %366 = memref.load %arg1[%c81] : memref<98xf32, #tpu.memory_space<smem>>
    %367 = vector.broadcast %366 : f32 to vector<1x256xf32>
    %368 = arith.mulf %367, %349 : vector<1x256xf32>
    %369 = arith.addf %338, %368 : vector<1x256xf32>
    %c88 = arith.constant 88 : index
    %370 = memref.load %arg1[%c88] : memref<98xf32, #tpu.memory_space<smem>>
    %371 = vector.broadcast %370 : f32 to vector<1x256xf32>
    %372 = arith.mulf %371, %349 : vector<1x256xf32>
    %373 = arith.addf %342, %372 : vector<1x256xf32>
    %c95 = arith.constant 95 : index
    %374 = memref.load %arg1[%c95] : memref<98xf32, #tpu.memory_space<smem>>
    %375 = vector.broadcast %374 : f32 to vector<1x256xf32>
    %376 = arith.mulf %375, %349 : vector<1x256xf32>
    %377 = arith.addf %346, %376 : vector<1x256xf32>
    %c254_i32_24 = arith.constant 254 : i32
    %378 = tpu.dynamic_rotate %4 by %c254_i32_24 dim 1 : vector<1x256xf32>, i32 -> vector<1x256xf32>
    %cst_25 = arith.constant 0.000000e+00 : f32
    %379 = vector.broadcast %cst_25 : f32 to vector<1x256xf32>
    %380 = arith.select %16, %378, %379 : vector<1x256xi1>, vector<1x256xf32>
    %c54 = arith.constant 54 : index
    %381 = memref.load %arg1[%c54] : memref<98xf32, #tpu.memory_space<smem>>
    %382 = vector.broadcast %381 : f32 to vector<1x256xf32>
    %383 = arith.mulf %382, %380 : vector<1x256xf32>
    %384 = arith.addf %353, %383 : vector<1x256xf32>
    %c61 = arith.constant 61 : index
    %385 = memref.load %arg1[%c61] : memref<98xf32, #tpu.memory_space<smem>>
    %386 = vector.broadcast %385 : f32 to vector<1x256xf32>
    %387 = arith.mulf %386, %380 : vector<1x256xf32>
    %388 = arith.addf %357, %387 : vector<1x256xf32>
    %c68 = arith.constant 68 : index
    %389 = memref.load %arg1[%c68] : memref<98xf32, #tpu.memory_space<smem>>
    %390 = vector.broadcast %389 : f32 to vector<1x256xf32>
    %391 = arith.mulf %390, %380 : vector<1x256xf32>
    %392 = arith.addf %361, %391 : vector<1x256xf32>
    %c75 = arith.constant 75 : index
    %393 = memref.load %arg1[%c75] : memref<98xf32, #tpu.memory_space<smem>>
    %394 = vector.broadcast %393 : f32 to vector<1x256xf32>
    %395 = arith.mulf %394, %380 : vector<1x256xf32>
    %396 = arith.addf %365, %395 : vector<1x256xf32>
    %c82 = arith.constant 82 : index
    %397 = memref.load %arg1[%c82] : memref<98xf32, #tpu.memory_space<smem>>
    %398 = vector.broadcast %397 : f32 to vector<1x256xf32>
    %399 = arith.mulf %398, %380 : vector<1x256xf32>
    %400 = arith.addf %369, %399 : vector<1x256xf32>
    %c89 = arith.constant 89 : index
    %401 = memref.load %arg1[%c89] : memref<98xf32, #tpu.memory_space<smem>>
    %402 = vector.broadcast %401 : f32 to vector<1x256xf32>
    %403 = arith.mulf %402, %380 : vector<1x256xf32>
    %404 = arith.addf %373, %403 : vector<1x256xf32>
    %c96 = arith.constant 96 : index
    %405 = memref.load %arg1[%c96] : memref<98xf32, #tpu.memory_space<smem>>
    %406 = vector.broadcast %405 : f32 to vector<1x256xf32>
    %407 = arith.mulf %406, %380 : vector<1x256xf32>
    %408 = arith.addf %377, %407 : vector<1x256xf32>
    %c253_i32_26 = arith.constant 253 : i32
    %409 = tpu.dynamic_rotate %4 by %c253_i32_26 dim 1 : vector<1x256xf32>, i32 -> vector<1x256xf32>
    %cst_27 = arith.constant 0.000000e+00 : f32
    %410 = vector.broadcast %cst_27 : f32 to vector<1x256xf32>
    %411 = arith.select %18, %409, %410 : vector<1x256xi1>, vector<1x256xf32>
    %c55 = arith.constant 55 : index
    %412 = memref.load %arg1[%c55] : memref<98xf32, #tpu.memory_space<smem>>
    %413 = vector.broadcast %412 : f32 to vector<1x256xf32>
    %414 = arith.mulf %413, %411 : vector<1x256xf32>
    %415 = arith.addf %384, %414 : vector<1x256xf32>
    %c62 = arith.constant 62 : index
    %416 = memref.load %arg1[%c62] : memref<98xf32, #tpu.memory_space<smem>>
    %417 = vector.broadcast %416 : f32 to vector<1x256xf32>
    %418 = arith.mulf %417, %411 : vector<1x256xf32>
    %419 = arith.addf %388, %418 : vector<1x256xf32>
    %c69 = arith.constant 69 : index
    %420 = memref.load %arg1[%c69] : memref<98xf32, #tpu.memory_space<smem>>
    %421 = vector.broadcast %420 : f32 to vector<1x256xf32>
    %422 = arith.mulf %421, %411 : vector<1x256xf32>
    %423 = arith.addf %392, %422 : vector<1x256xf32>
    %c76 = arith.constant 76 : index
    %424 = memref.load %arg1[%c76] : memref<98xf32, #tpu.memory_space<smem>>
    %425 = vector.broadcast %424 : f32 to vector<1x256xf32>
    %426 = arith.mulf %425, %411 : vector<1x256xf32>
    %427 = arith.addf %396, %426 : vector<1x256xf32>
    %c83 = arith.constant 83 : index
    %428 = memref.load %arg1[%c83] : memref<98xf32, #tpu.memory_space<smem>>
    %429 = vector.broadcast %428 : f32 to vector<1x256xf32>
    %430 = arith.mulf %429, %411 : vector<1x256xf32>
    %431 = arith.addf %400, %430 : vector<1x256xf32>
    %c90 = arith.constant 90 : index
    %432 = memref.load %arg1[%c90] : memref<98xf32, #tpu.memory_space<smem>>
    %433 = vector.broadcast %432 : f32 to vector<1x256xf32>
    %434 = arith.mulf %433, %411 : vector<1x256xf32>
    %435 = arith.addf %404, %434 : vector<1x256xf32>
    %c97 = arith.constant 97 : index
    %436 = memref.load %arg1[%c97] : memref<98xf32, #tpu.memory_space<smem>>
    %437 = vector.broadcast %436 : f32 to vector<1x256xf32>
    %438 = arith.mulf %437, %411 : vector<1x256xf32>
    %439 = arith.addf %408, %438 : vector<1x256xf32>
    %c48_i32 = arith.constant 48 : i32
    %440 = tpu.dynamic_rotate %415 by %c48_i32 dim 1 : vector<1x256xf32>, i32 -> vector<1x256xf32>
    %c48_i32_28 = arith.constant 48 : i32
    %441 = vector.broadcast %c48_i32_28 : i32 to vector<1x256xi32>
    %442 = arith.cmpi sge, %5, %441 : vector<1x256xi32>
    %cst_29 = arith.constant 0.000000e+00 : f32
    %443 = vector.broadcast %cst_29 : f32 to vector<1x256xf32>
    %444 = arith.select %442, %440, %443 : vector<1x256xi1>, vector<1x256xf32>
    %c32_i32 = arith.constant 32 : i32
    %445 = tpu.dynamic_rotate %419 by %c32_i32 dim 1 : vector<1x256xf32>, i32 -> vector<1x256xf32>
    %c32_i32_30 = arith.constant 32 : i32
    %446 = vector.broadcast %c32_i32_30 : i32 to vector<1x256xi32>
    %447 = arith.cmpi sge, %5, %446 : vector<1x256xi32>
    %cst_31 = arith.constant 0.000000e+00 : f32
    %448 = vector.broadcast %cst_31 : f32 to vector<1x256xf32>
    %449 = arith.select %447, %445, %448 : vector<1x256xi1>, vector<1x256xf32>
    %450 = arith.addf %444, %449 : vector<1x256xf32>
    %c16_i32 = arith.constant 16 : i32
    %451 = tpu.dynamic_rotate %423 by %c16_i32 dim 1 : vector<1x256xf32>, i32 -> vector<1x256xf32>
    %c16_i32_32 = arith.constant 16 : i32
    %452 = vector.broadcast %c16_i32_32 : i32 to vector<1x256xi32>
    %453 = arith.cmpi sge, %5, %452 : vector<1x256xi32>
    %cst_33 = arith.constant 0.000000e+00 : f32
    %454 = vector.broadcast %cst_33 : f32 to vector<1x256xf32>
    %455 = arith.select %453, %451, %454 : vector<1x256xi1>, vector<1x256xf32>
    %456 = arith.addf %450, %455 : vector<1x256xf32>
    %457 = arith.addf %456, %427 : vector<1x256xf32>
    %c240_i32 = arith.constant 240 : i32
    %458 = tpu.dynamic_rotate %431 by %c240_i32 dim 1 : vector<1x256xf32>, i32 -> vector<1x256xf32>
    %c240_i32_34 = arith.constant 240 : i32
    %459 = vector.broadcast %c240_i32_34 : i32 to vector<1x256xi32>
    %460 = arith.cmpi slt, %5, %459 : vector<1x256xi32>
    %cst_35 = arith.constant 0.000000e+00 : f32
    %461 = vector.broadcast %cst_35 : f32 to vector<1x256xf32>
    %462 = arith.select %460, %458, %461 : vector<1x256xi1>, vector<1x256xf32>
    %463 = arith.addf %457, %462 : vector<1x256xf32>
    %c224_i32 = arith.constant 224 : i32
    %464 = tpu.dynamic_rotate %435 by %c224_i32 dim 1 : vector<1x256xf32>, i32 -> vector<1x256xf32>
    %c224_i32_36 = arith.constant 224 : i32
    %465 = vector.broadcast %c224_i32_36 : i32 to vector<1x256xi32>
    %466 = arith.cmpi slt, %5, %465 : vector<1x256xi32>
    %cst_37 = arith.constant 0.000000e+00 : f32
    %467 = vector.broadcast %cst_37 : f32 to vector<1x256xf32>
    %468 = arith.select %466, %464, %467 : vector<1x256xi1>, vector<1x256xf32>
    %469 = arith.addf %463, %468 : vector<1x256xf32>
    %c208_i32 = arith.constant 208 : i32
    %470 = tpu.dynamic_rotate %439 by %c208_i32 dim 1 : vector<1x256xf32>, i32 -> vector<1x256xf32>
    %c208_i32_38 = arith.constant 208 : i32
    %471 = vector.broadcast %c208_i32_38 : i32 to vector<1x256xi32>
    %472 = arith.cmpi slt, %5, %471 : vector<1x256xi32>
    %cst_39 = arith.constant 0.000000e+00 : f32
    %473 = vector.broadcast %cst_39 : f32 to vector<1x256xf32>
    %474 = arith.select %472, %470, %473 : vector<1x256xi1>, vector<1x256xf32>
    %475 = arith.addf %469, %474 : vector<1x256xf32>
    %476 = arith.negf %475 : vector<1x256xf32>
    %477 = math.exp %476 : vector<1x256xf32>
    %cst_40 = arith.constant 1.000000e+00 : f32
    %478 = vector.broadcast %cst_40 : f32 to vector<1x256xf32>
    %479 = arith.addf %478, %477 : vector<1x256xf32>
    %480 = arith.divf %478, %479 : vector<1x256xf32>
    %cst_41 = arith.constant 1.000000e+00 : f32
    %481 = vector.broadcast %cst_41 : f32 to vector<1x256xf32>
    %482 = arith.addf %481, %480 : vector<1x256xf32>
    %c0_42 = arith.constant 0 : index
    %c0_43 = arith.constant 0 : index
    %c0_44 = arith.constant 0 : index
    %483 = vector.load %arg3[%c0_42, %c0_43, %c0_44] : memref<1x4x256xf32, #tpu.memory_space<vmem>>, vector<1x4x256xf32>
    %484 = vector.shape_cast %482 : vector<1x256xf32> to vector<1x1x256xf32>
    %485 = vector.broadcast %484 : vector<1x1x256xf32> to vector<1x4x256xf32>
    %486 = arith.mulf %483, %485 : vector<1x4x256xf32>
    %c0_45 = arith.constant 0 : index
    %c0_46 = arith.constant 0 : index
    %c0_47 = arith.constant 0 : index
    %487 = vector.load %arg4[%c0_45, %c0_46, %c0_47] : memref<1x4x256xf32, #tpu.memory_space<vmem>>, vector<1x4x256xf32>
    tpu.vector_store %arg4[%c0_45, %c0_46, %c0_47], %486 {strides = array<i32>} : memref<1x4x256xf32, #tpu.memory_space<vmem>>, vector<1x4x256xf32>,
    return
  }
  func.func @transform_0(%arg0: i32, %arg1: memref<98xf32, #tpu.memory_space<smem>>) -> (i32, i32) {
    %c0_i32 = arith.constant 0 : i32
    %c0_i32_0 = arith.constant 0 : i32
    %c0_i32_1 = arith.constant 0 : i32
    return %c0_i32, %c0_i32_0 : i32, i32
  }
  func.func @transform_1(%arg0: i32, %arg1: memref<98xf32, #tpu.memory_space<smem>>) -> (i32, i32, i32) {
    %c0_i32 = arith.constant 0 : i32
    %c0_i32_0 = arith.constant 0 : i32
    %c0_i32_1 = arith.constant 0 : i32
    return %arg0, %c0_i32, %c0_i32_0 : i32, i32, i32
  }
  func.func @transform_2(%arg0: i32, %arg1: memref<98xf32, #tpu.memory_space<smem>>) -> (i32, i32, i32) {
    %c0_i32 = arith.constant 0 : i32
    %c0_i32_0 = arith.constant 0 : i32
    %c0_i32_1 = arith.constant 0 : i32
    return %arg0, %c0_i32, %c0_i32_0 : i32, i32, i32
  }
}

</mosaic_0001>

<bundles_post_ra>
// kernel: tpu_custom_call.1
= control target key start
LH: loop header
LB: loop body
LE: loop exit
PB: predicated region body
PF: predicated region fallthrough
CT: control target
= control target key end

     0   :  { %s2972_s0 = inlined_call_operand.hbm [shape: f32[98], index: 0, kind: input, shape index: {}]   ;;  %s2973_s1 = inlined_call_operand.vmem [shape: s32[1,256], index: 1, kind: input, shape index: {}]   ;;  %s2974_s2 = inlined_call_operand.hbm [shape: f32[2,4,256], index: 2, kind: input, shape index: {}]   ;;  %s2975_s3 = inlined_call_operand.hbm [shape: f32[2,4,256], index: 3, kind: output, shape index: {}]  }
   0x1   :  { %3061 = sst [smem:[#allocation94_spill]] %s2973_s1  ;;  %s1620_s14 = scalar_lea.hbm %s2972_s0, 16 }
   0x2   :  { %3062 = sst [smem:[#allocation95_spill]] %s2974_s2  ;;  %p1621_p0 = scmp.ne.s32.totalorder %s2972_s0, %s1620_s14 }
   0x3   :  { %3063 = sst [smem:[#allocation96_spill]] %s2975_s3  ;;  %p1624_p1 = scmp.lt.u32.totalorder %s1620_s14, %s2972_s0 }
   0x5   :  { %p1626_p2 = pnand %p1624_p1, %p1621_p0 }
   0x7   :  { %1629 = shalt.err (!%p1626_p2)  }
   0x8   :  { %s1730_s19 = smov [#allocation3]  }
   0x9   :  { %9 = dma.hbm_to_smem %s2972_s0, 16, %s1730_s19, [#allocation2] }
   0xa   :  { %1704 = dma.done.wait [#allocation2], 16 }
   0xb   :  { %1705 = vsyncadd [#allocation2], 4294967280 }
   0xc   :  { %11 = sfence }
   0xd   :  { %12 = vsyncpa [#allocation5], 0 }
   0xe   :  { %14 = vsyncpa [#allocation5 + $0x1], 0 }
   0xf   :  { %15 = vsyncpa [#allocation6], 0 }
  0x10   :  { %17 = vsyncpa [#allocation6 + $0x1], 0  ;;  %s1778_s22 = smov 0   ;;  %s1780_s23 = smov 0  }
  0x11   :  { %s1782_s24 = smov 0   ;;  %s1784_s25 = smov 0  }
  0x12 LB: > { %3064 = sst [smem:[#allocation11_spill]] %s1716_s22  ;;  %s1799_s0 = sadd.s32 4294967295, %s1728_s25   ;;  %s1728_s25 = sphi %s1784_s25, %s3326_s25   ;;  %s1724_s24 = sphi %s1782_s24, %s3329_s24   ;;  %s1720_s23 = sphi %s1780_s23, %s3328_s23   ;;  %s1716_s22 = sphi %s1778_s22, %s3327_s22  }
  0x13   : > { %3065 = sst [smem:[#allocation12_spill]] %s1720_s23  ;;  %s1435_s26 = sadd.s32 4294967294, %s1728_s25  }
  0x14   : > { %3066 = sst [smem:[#allocation13_spill]] %s1724_s24  ;;  %s1803_s27 = sadd.s32 1, %s1728_s25  }
  0x15   : > { %3067 = sst [smem:[#allocation14_spill]] %s1728_s25  ;;  %s51_s28 = sadd.s32 1, %s1724_s24 }
  0x16   : > { %3068 = sst [smem:[#allocation15_spill]] %s1799_s0  ;;  %s48_s29 = ssub.s32 %s1728_s25, %s1803_s27 }
  0x17   : > { %3069 = sst [smem:[#allocation16_spill]] %s1803_s27  ;;  %p58_p3 = scmp.ne.s32.totalorder %s1724_s24, %s1720_s23 }
  0x18   : > { %p49_p4 = scmp.eq.s32.totalorder %s48_s29, 0  ;;  %p59_p5 = scmp.eq.s32.totalorder %s1728_s25, 0 }
  0x19   : > { %p64_p6 = scmp.ne.s32.totalorder %s1720_s23, %s1716_s22  ;;  %p65_p7 = scmp.eq.s32.totalorder %s1799_s0, 0 }
  0x1a   : > { %s1815_s30 = scalar_select %p49_p4, %s1724_s24, %s51_s28  }
  0x1b   : > { %p1817_p8 = por %p59_p5, %p58_p3  ;;  %p1821_p9 = por %p65_p7, %p64_p6 }
  0x1c   : > { %3070 = sst [smem:[#allocation17_spill]] %s1815_s30  ;;  %p88_p10 = scmp.eq.s32.totalorder %s1799_s0, 1 }
  0x1d   : > { %p94_p11 = scmp.eq.s32.totalorder %s1435_s26, 1  ;;  %p1562_p13 = scmp.lt.s32.totalorder %s1728_s25, 2 }
  0x1e   : > { %p1828_p0 = por %p88_p10, %p58_p3  ;;  %s117_s8 = sand.u32 1, %s1724_s24  }
  0x1f   : > { %p1832_p1 = por %p94_p11, %p64_p6  ;;  %s1548_s9 = sshll.u32 %s1728_s25, 7 }
  0x20   : > { %s3073_s6 = scalar_select %p1828_p0, 1, 0 }
  0x21   : > { %s3075_s7 = scalar_select %p1832_p1, 1, 0 }
  0x22   : > { %3074 = sst [smem:[#allocation18_spill]] %s3073_s6  ;;  %s1438_s10 = sshll.u32 %s117_s8, 3 }
  0x23   : > { %3076 = sst [smem:[#allocation19_spill]] %s3075_s7  ;;  %s3077_s2 = sld [smem:[#allocation95_spill]] }
  0x24   : > { %s121_s14 = scalar_lea.vmem [#allocation4], %s1438_s10  ;;  %p1845_p2 = pnand %p1562_p13, %p1817_p8 }
  0x25   : > { %s129_s15 = sshll.u32 %s121_s14, 4  ;;  %s118_s17 = scalar_lea.sflag [#allocation5], %s117_s8  ;;  %s1849_s15 = int_to_ptr.vmem [resolvable:$true] %s129_s15 }
  0x26   : > { %p1632_p6 = pneg %p1845_p2 }
  0x29   : > { %s1841_s13 = scalar_lea.hbm %s3077_s2, %s1548_s9  ;;  %s1635_s21 = scalar_lea.hbm %s3077_s2, 256 }
  0x2a   : > { %s1630_s18 = scalar_lea.hbm %s1841_s13, 128  ;;  %p1636_p8 = scmp.lt.u32.totalorder %s1841_s13, %s3077_s2 }
  0x2b   : > { %p1631_p5 = scmp.ne.s32.totalorder %s1841_s13, %s1630_s18  ;;  %p1637_p11 = scmp.lt.u32.totalorder %s1635_s21, %s1630_s18 }
  0x2c   : > { %p1639_p12 = scmp.lt.u32.totalorder %s1630_s18, %s1841_s13 }
  0x2d   : > { %p1633_p7 = pnand %p1632_p6, %p1631_p5  ;;  %p1638_p13 = por %p1637_p11, %p1636_p8 }
  0x2f   : > { %p1634_p10 = pneg %p1633_p7  ;;  %p1640_p3 = por %p1639_p12, %p1638_p13 }
  0x31   : > { %p1641_p4 = pnand %p1640_p3, %p1634_p10 }
  0x33   : > { %1644 = shalt.err (!%p1641_p4)
}
  0x34   : > { %s1645_s29 = scalar_lea.vmem %s1849_s15, 128  ;;  %s1731_s4 = smov [#allocation4]  }
  0x35   : > { %p1646_p5 = scmp.ne.s32.totalorder %s1849_s15, %s1645_s29  ;;  %s1650_s8 = sshll.u32 %s1731_s4, 4  ;;  %s1651_s8 = int_to_ptr.vmem [resolvable:$false] %s1650_s8 }
  0x36   : > { %s1652_s9 = scalar_lea.vmem %s1651_s8, 256  ;;  %p1653_p0 = scmp.lt.s32.totalorder %s1849_s15, %s1651_s8 }
  0x37   : > { %p1648_p7 = pnand %p1646_p5, %p1632_p6  ;;  %p1654_p8 = scmp.lt.s32.totalorder %s1652_s9, %s1645_s29 }
  0x39   : > { %p1649_p1 = pneg %p1648_p7  ;;  %p1655_p11 = por %p1654_p8, %p1653_p0 }
  0x3b   : > { %p1656_p12 = pnand %p1655_p11, %p1649_p1 }
  0x3d   : > { %1659 = shalt.err (!%p1656_p12)
}
  0x3e   : > { %1557 = dma.hbm_to_vmem [thread:$0]  (!%p1845_p2), %s1841_s13, 128, %s1849_s15, %s118_s17  }
  0x3f   : > { %p3079_p3 = scmp.lt.s32.totalorder %s1728_s25, 3  ;;  %p3080_p4 = scmp.ge.s32.totalorder %s1728_s25, 1 }
  0x41   : > { %p135_p6 = pnand %p3080_p4, %p3079_p3 }
  0x43   : > { %138 = sbr.rel (%p135_p6) target bundleno = 477 (0x1dd), region = 28 }
  0x4a   : > { %s1883_s10 = sand.u32 1, %s1720_s23  }
  0x4b   : > { %3081 = sst [smem:[#allocation20_spill]] %s1883_s10  ;;  %s2977_s11 = sshll.u32 %s1883_s10, 3 }
  0x4c   : > { %s141_s12 = scalar_lea.sflag [#allocation5], %s1883_s10  ;;  %s1889_s14 = scalar_lea.vmem [#allocation4], %s2977_s11 }
  0x4d   : > { %3082 = sst [smem:[#allocation21_spill]] %s1889_s14 }
  0x4e   : > { %1707 = dma.done.wait (%p1821_p9), %s141_s12, 128  }
  0x4f   : > { %1709 = vsyncadd (%p1821_p9), %s141_s12, 4294967168  ;;  %vm169_vm0 = vcmask 1043456   ;;  %v165_v0 = vld [vmem:[%s1889_s14] sm:$0xff]  ;;  %s1732_s5 = smov 2   ;;  %s1733_s13 = smov 3  }
  0x50   : > { %v170_v1 = vsel %vm169_vm0, %v165_v0, -inf  ;;  %v167_v2 = vcombine.high %v165_v0, %v165_v0  ;;  %v184_v10 = vsel %vm169_vm0, %v165_v0, 0.0  ;;  %s1734_s15 = smov 1   ;;  %s1735_s16 = smov 127  }
  0x51   : > { %v171_v3 = vrot.slane %v170_v1, 4  ;;  %v185_v16 = vrot.slane %v184_v10, 4  ;;  %s1467_s17 = sld [smem:[#allocation3 + $0x18]]  ;;  %s1736_s18 = smov 126  }
  0x52   : > { %v177_v4 = vsel %vm169_vm0, %v167_v2, -inf  ;;  %v191_v9 = vsel %vm169_vm0, %v167_v2, 0.0  ;;  %s1737_s19 = smov 125   ;;  %s1464_s20 = sld [smem:[#allocation3 + $0x3]] }
  0x53   : > { %v172_v5 = vmax.f32 %v170_v1, %v171_v3  ;;  %v178_v6 = vrot.slane %v177_v4, 4  ;;  %v192_v15 = vrot.slane %v191_v9, 4  ;;  %v186_v21 = vadd.f32 %v185_v16, %v184_v10  ;;  %s1465_s21 = sld [smem:[#allocation3 + $0xa]]  ;;  %s1466_s26 = sld [smem:[#allocation3 + $0x11]] }
  0x54   : > { %s1468_s28 = sld [smem:[#allocation3 + $0x1f]]  ;;  %s1469_s29 = sld [smem:[#allocation3 + $0x26]] }
  0x55   : > { %v173_v7 = vrot.slane %v172_v5, 2  ;;  %v179_v8 = vmax.f32 %v177_v4, %v178_v6  ;;  %v193_v20 = vadd.f32 %v192_v15, %v191_v9  ;;  %v187_v23 = vrot.slane %v186_v21, 2  ;;  %s1513_s4 = sld [smem:[#allocation3 + $0x34]]  ;;  %s1514_s8 = sld [smem:[#allocation3 + $0x3b]] }
  0x56   : > { %s1470_s9 = sld [smem:[#allocation3 + $0x2d]]  ;;  %s1515_s12 = sld [smem:[#allocation3 + $0x42]] }
  0x57   : > { %v174_v11 = vmax.f32 %v172_v5, %v173_v7  ;;  %v180_v12 = vrot.slane %v179_v8, 2  ;;  %v194_v22 = vrot.slane %v193_v20, 2  ;;  %v188_v25 = vadd.f32 %v187_v23, %v186_v21  ;;  %s2096_s11 = sld [smem:[#allocation3 + $0x12]]  ;;  %s2098_s2 = sld [smem:[#allocation3 + $0x19]] }
  0x58   : > { %v435_v30 = vstv %s1467_s17  ;;  %v366_v36 = vstv %s1464_s20  ;;  %s2064_s17 = sld [smem:[#allocation3 + $0x1]]  ;;  %s2070_s20 = sld [smem:[#allocation3 + $0x16]] }
  0x59   : > { %v175_v13 = vrot.slane %v174_v11, 1  ;;  %v181_v14 = vmax.f32 %v179_v8, %v180_v12  ;;  %v195_v24 = vadd.f32 %v194_v22, %v193_v20  ;;  %v189_v27 = vrot.slane %v188_v25, 1  ;;  %s2100_s30 = sld [smem:[#allocation3 + $0x20]]  ;;  %s2102_s24 = sld [smem:[#allocation3 + $0x27]] }
  0x5a   : > { %v389_v39 = vstv %s1465_s21  ;;  %v412_v42 = vstv %s1466_s26  ;;  %v458_v48 = vstv %s1468_s28  ;;  %v481_v52 = vstv %s1469_s29  ;;  %s2072_s21 = sld [smem:[#allocation3 + $0x1d]]  ;;  %s2074_s26 = sld [smem:[#allocation3 + $0x24]] }
  0x5b   : > { %v1896_v17 = vmax.f32 %v174_v11, %v175_v13  ;;  %v182_v18 = vrot.slane %v181_v14, 1  ;;  %v196_v26 = vrot.slane %v195_v24, 1  ;;  %v190_v29 = vadd.f32 %v189_v27, %v188_v25  ;;  %s2076_s28 = sld [smem:[#allocation3 + $0x2b]]  ;;  %s2078_s29 = sld [smem:[#allocation3 + $0x2]] }
  0x5c   : > { %v848_v53 = vstv %s1513_s4  ;;  %v871_v58 = vstv %s1514_s8  ;;  %v504_v63 = vstv %s1470_s9  ;;  %v894_v4 = vstv %s1515_s12  ;;  %s2080_s4 = sld [smem:[#allocation3 + $0x9]]  ;;  %s2082_s8 = sld [smem:[#allocation3 + $0x10]] }
  0x5d   : > { %257 = vrot.lane.b32.xlu1 %v1896_v17, %s1732_s5  ;;  %210 = vrot.lane.b32.xlu0 %v1896_v17, %s1733_s13  ;;  %v1902_v19 = vmax.f32 %v181_v14, %v182_v18  ;;  %v197_v28 = vadd.f32 %v196_v26, %v195_v24  ;;  %v1921_v31 = vmul.f32 %v435_v30, %v1896_v17  ;;  %v1932_v34 = vmul.f32 0.25, %v190_v29  ;;  %s2084_s9 = sld [smem:[#allocation3 + $0x17]]  ;;  %s2086_s12 = sld [smem:[#allocation3 + $0x1e]] }
  0x5e   : > { %v1941_v37 = vmul.f32 %v366_v36, %v1896_v17  ;;  %v1947_v40 = vmul.f32 %v389_v39, %v1896_v17  ;;  %v1955_v44 = vmul.f32 %v412_v42, %v1896_v17  ;;  %v1969_v49 = vmul.f32 %v458_v48, %v1896_v17  ;;  %3083 = sst [smem:[#allocation22_spill]] %s2064_s17  ;;  %s2106_s27 = sld [smem:[#allocation3 + $0x5]] }
  0x5f   : > { %v1924_v32 = vmul.f32 %v435_v30, %v1902_v19  ;;  %v1930_v33 = vmul.f32 0.25, %v197_v28  ;;  %v1944_v38 = vmul.f32 %v366_v36, %v1902_v19  ;;  %v1950_v41 = vmul.f32 %v389_v39, %v1902_v19  ;;  %3086 = sst [smem:[#allocation25_spill]] %s2070_s20  ;;  %s2104_s23 = sld [smem:[#allocation3 + $0x2e]] }
  0x60   : > { %v1958_v45 = vmul.f32 %v412_v42, %v1902_v19  ;;  %v1976_v50 = vmul.f32 %v458_v48, %v1902_v19  ;;  %v1981_v54 = vmul.f32 %v481_v52, %v1896_v17  ;;  %v1984_v55 = vmul.f32 %v481_v52, %v1902_v19  ;;  %3087 = sst [smem:[#allocation26_spill]] %s2072_s21  ;;  %s2108_s25 = sld [smem:[#allocation3 + $0xc]] }
  0x61   : > { %311 = vrot.lane.b32.xlu0 %v1896_v17, %s1734_s15  ;;  %259 = vrot.lane.b32.xlu1 %v1902_v19, %s1732_s5  ;;  %v440_v35 = vcombine.low %v1921_v31, %v1924_v32  ;;  %v371_v43 = vcombine.low %v1941_v37, %v1944_v38  ;;  %v394_v46 = vcombine.low %v1947_v40, %v1950_v41  ;;  %3088 = sst [smem:[#allocation27_spill]] %s2074_s26  ;;  %v1738_v24 = vmov 1966171168   ;;  %s2112_s22 = sld [smem:[#allocation3 + $0x1a]] }
  0x62   : > { %v417_v47 = vcombine.low %v1955_v44, %v1958_v45  ;;  %v463_v51 = vcombine.low %v1969_v49, %v1976_v50  ;;  %v1991_v56 = vmul.f32 %v848_v53, %v1932_v34  ;;  %v1994_v57 = vmul.f32 %v848_v53, %v1930_v33  ;;  %3089 = sst [smem:[#allocation28_spill]] %s2076_s28  ;;  %s2110_s7 = sld [smem:[#allocation3 + $0x13]] }
  0x63   : > { %v1997_v59 = vmul.f32 %v871_v58, %v1932_v34  ;;  %v2000_v60 = vmul.f32 %v871_v58, %v1930_v33  ;;  %v486_v62 = vcombine.low %v1981_v54, %v1984_v55  ;;  %v2009_v1 = vmul.f32 %v504_v63, %v1896_v17  ;;  %3090 = sst [smem:[#allocation29_spill]] %s2078_s29  ;;  %s2114_s3 = sld [smem:[#allocation3 + $0x21]] }
  0x64   : > { %v853_v61 = vcombine.low %v1991_v56, %v1994_v57  ;;  %v2016_v2 = vmul.f32 %v504_v63, %v1902_v19  ;;  %v2025_v5 = vmul.f32 %v894_v4, %v1932_v34  ;;  %v2028_v6 = vmul.f32 %v894_v4, %v1930_v33  ;;  %3091 = sst [smem:[#allocation30_spill]] %s2080_s4  ;;  %s2116_s6 = sld [smem:[#allocation3 + $0x28]] }
  0x65   : > { %526 = vrot.lane.b32.xlu0 %v1896_v17, %s1735_s16  ;;  %313 = vrot.lane.b32.xlu1 %v1902_v19, %s1734_s15  ;;  %v876_v0 = vcombine.low %v1997_v59, %v2000_v60  ;;  %3092 = sst [smem:[#allocation31_spill]] %s2082_s8  ;;  %v221_v25 = vunpack.c.l.s4 %v1738_v24  ;;  %v200_v26 = vlaneseq  ;;  %s2122_s10 = sld [smem:[#allocation3 + $0x6]]  ;;  %v296_v39 = vstv %s2070_s20 }
  0x66   : > { %v509_v3 = vcombine.low %v2009_v1, %v2016_v2  ;;  %v899_v7 = vcombine.low %v2025_v5, %v2028_v6  ;;  %3093 = sst [smem:[#allocation32_spill]] %s2084_s9  ;;  %s2120_s14 = sld [smem:[#allocation3 + $0x2f]]  ;;  %v300_v42 = vstv %s2072_s21  ;;  %v304_v48 = vstv %s2074_s26 }
  0x67   : > { %3094 = sst [smem:[#allocation33_spill]] %s2086_s12  ;;  %v222_v27 = vunpack.c.0.s8 %v221_v25  ;;  %v2118_v28 = vshrl.u32 %v200_v26, 7  ;;  %s2124_s0 = sld [smem:[#allocation3 + $0xd]]  ;;  %v2136_v29 = vand.u32 127, %v200_v26  ;;  %v308_v52 = vstv %s2076_s28 }
  0x68   : > { %3099 = sst [smem:[#allocation38_spill]] %s2096_s11  ;;  %s2126_s1 = sld [smem:[#allocation3 + $0x14]]  ;;  %v338_v53 = vstv %s2078_s29  ;;  %v342_v58 = vstv %s2080_s4  ;;  %v346_v63 = vstv %s2082_s8  ;;  %v350_v4 = vstv %s2084_s9 }
  0x69   : > { %580 = vrot.lane.b32.xlu0 %v1896_v17, %s1736_s18  ;;  %528 = vrot.lane.b32.xlu1 %v1902_v19, %s1735_s16  ;;  %3100 = sst [smem:[#allocation39_spill]] %s2098_s2  ;;  %v2139_v30 = vsub.s32 %v222_v27, %v2118_v28  ;;  %s2167_s26 = sld [smem:[#allocation3 + $0x2a]]  ;;  %vm261_vm1 = vcmp.lt.s32.totalorder %v2136_v29, 2  ;;  %vm315_vm2 = vcmp.lt.s32.totalorder %v2136_v29, 1  ;;  %vm530_vm3 = vcmp.lt.s32.totalorder %v2136_v29, 127 }
  0x6a   : > { %3101 = sst [smem:[#allocation40_spill]] %s2104_s23  ;;  %s2169_s28 = sld [smem:[#allocation3 + $0x46]]  ;;  %vm584_vm5 = vcmp.lt.s32.totalorder %v2136_v29, 126  ;;  %vm638_vm7 = vcmp.lt.s32.totalorder %v2136_v29, 125  ;;  %vm214_vm8 = vcmp.lt.s32.totalorder %v2136_v29, 3  ;;  %v2384_v5 = vsub.s32 1, %v2118_v28 }
  0x6b   : > { %3102 = sst [smem:[#allocation41_spill]] %s2106_s27  ;;  %s2177_s9 = sld [smem:[#allocation3 + $0x38]]  ;;  %v2211_v26 = vrot.slane %v440_v35, %v2139_v30  ;;  %v2230_v31 = vrot.slane %v394_v46, %v2139_v30  ;;  %v2245_v37 = vrot.slane %v417_v47, %v2139_v30  ;;  %v2277_v24 = vrot.slane %v463_v51, %v2139_v30 }
  0x6c   : > { %3103 = sst [smem:[#allocation42_spill]] %s2110_s7  ;;  %s2134_s7 = sld [smem:[#allocation3 + $0x30]]  ;;  %v2285_v45 = vrot.slane %v853_v61, %v2139_v30  ;;  %v2298_v49 = vrot.slane %v486_v62, %v2139_v30  ;;  %v2307_v61 = vrot.slane %v876_v0, %v2139_v30  ;;  %v2348_v0 = vrot.slane %v509_v3, %v2139_v30 }
  0x6d   : > { %634 = vrot.lane.b32.xlu0 %v1896_v17, %s1737_s19  ;;  %582 = vrot.lane.b32.xlu1 %v1902_v19, %s1736_s18  ;;  %3104 = sst [smem:[#allocation43_spill]] %s2112_s22  ;;  %s3119_s21 = sld [smem:[#allocation42_spill]]  ;;  %v2370_v3 = vrot.slane %v899_v7, %v2139_v30  ;;  %v3196_v47 = vstv %s2108_s25  ;;  %vm1204_vm13 = vcmp.lt.s32.totalorder %v2136_v29, 32  ;;  %vm1182_vm14 = vcmp.lt.s32.totalorder %v2136_v29, 48 }
  0x6e   : > { %3105 = sst [smem:[#allocation44_spill]] %s2114_s3  ;;  %s2128_s22 = sld [smem:[#allocation3 + $0x1b]]  ;;  %3149 = vst [vmem:[#allocation76_spill] sm:$0xff] %v2348_v0  ;;  %vm1207_vm15 = vcmp.ge.s32.totalorder %v2136_v29, 32  ;;  %vm1185_vm0 = vcmp.ge.s32.totalorder %v2136_v29, 48 }
  0x6f   : > { %3106 = sst [smem:[#allocation45_spill]] %s2116_s6  ;;  %s2130_s3 = sld [smem:[#allocation3 + $0x22]]  ;;  %3152 = vst [vmem:[#allocation79_spill] sm:$0xff] %v2370_v3 }
  0x70   : > { %3107 = sst [smem:[#allocation46_spill]] %s2122_s10  ;;  %s2132_s6 = sld [smem:[#allocation3 + $0x29]] }
  0x71   : > { %636 = vrot.lane.b32.xlu1 %v1902_v19, %s1737_s19  ;;  %212 = vrot.lane.b32.xlu0 %v1902_v19, %s1733_s13  ;;  %3108 = sst [smem:[#allocation47_spill]] %s2124_s0  ;;  %s3121_s4 = sld [smem:[#allocation43_spill]] }
  0x72   : > { %3109 = sst [smem:[#allocation48_spill]] %s2126_s1  ;;  %s3122_s8 = sld [smem:[#allocation44_spill]] }
  0x73   : > { %3113 = sst [smem:[#allocation52_spill]] %s2134_s7  ;;  %s2151_s7 = sld [smem:[#allocation3 + $0xe]]  ;;  %v3199_v25 = vstv %s3119_s21 }
  0x74   : > { %3110 = sst [smem:[#allocation49_spill]] %s2128_s22  ;;  %s2143_s22 = sld [smem:[#allocation3]] }
  0x75   : > { %690 = vrot.lane.b32.xlu1 %v1930_v33, %s1733_s13  ;;  %688 = vrot.lane.b32.xlu0 %v1932_v34, %s1733_s13  ;;  %s1518_s13 = sld [smem:[#allocation3 + $0x57]]  ;;  %3111 = sst [smem:[#allocation50_spill]] %s2130_s3 }
  0x76   : > { %3112 = sst [smem:[#allocation51_spill]] %s2132_s6  ;;  %s2145_s3 = sld [smem:[#allocation3 + $0x7]] }
  0x77   : > { %s2153_s6 = sld [smem:[#allocation3 + $0x15]]  ;;  %3118 = sst [smem:[#allocation57_spill]] %s2167_s26 }
  0x78   : > { %3120 = sst [smem:[#allocation42_spill]] %s2169_s28  ;;  %s3123_s29 = sld [smem:[#allocation45_spill]] }
  0x79   : > { %743 = vrot.lane.b32.xlu1 %v1930_v33, %s1732_s5  ;;  %741 = vrot.lane.b32.xlu0 %v1932_v34, %s1732_s5  ;;  %s1517_s5 = sld [smem:[#allocation3 + $0x50]]  ;;  %3114 = sst [smem:[#allocation53_spill]] %s2151_s7 }
  0x7a   : > { %s2175_s20 = sld [smem:[#allocation3 + $0x31]]  ;;  %3125 = sst [smem:[#allocation44_spill]] %s2177_s9  ;;  %v237_v32 = vstv %s2143_s22 }
  0x7b   : > { %v963_v11 = vstv %s1518_s13  ;;  %s2090_s13 = sld [smem:[#allocation3 + $0x2c]]  ;;  %s2186_s2 = sld [smem:[#allocation3 + $0x39]] }
  0x7c   : > { %v2041_v13 = vmul.f32 %v963_v11, %v1932_v34  ;;  %v2044_v14 = vmul.f32 %v963_v11, %v1930_v33  ;;  %v631_v11 = vstv %s2120_s14  ;;  %s2200_s27 = sld [smem:[#allocation3 + $0x3a]]  ;;  %s2202_s23 = sld [smem:[#allocation3 + $0x4d]]  ;;  %v240_v35 = vstv %s2145_s3 }
  0x7d   : > { %796 = vrot.lane.b32.xlu1 %v1930_v33, %s1734_s15  ;;  %794 = vrot.lane.b32.xlu0 %v1932_v34, %s1734_s15  ;;  %s1519_s15 = sld [smem:[#allocation3 + $0x5e]]  ;;  %s2215_s0 = sld [smem:[#allocation3 + $0x3c]]  ;;  %v246_v41 = vstv %s2153_s6 }
  0x7e   : > { %v968_v15 = vcombine.low %v2041_v13, %v2044_v14  ;;  %3115 = sst [smem:[#allocation54_spill]] %s2153_s6  ;;  %s2232_s11 = sld [smem:[#allocation3 + $0x40]] }
  0x7f   : > { %v940_v8 = vstv %s1517_s5  ;;  %s2088_s5 = sld [smem:[#allocation3 + $0x25]]  ;;  %s2239_s12 = sld [smem:[#allocation3 + $0x36]] }
  0x80   : > { %v2033_v9 = vmul.f32 %v940_v8, %v1932_v34  ;;  %v2036_v10 = vmul.f32 %v940_v8, %v1930_v33  ;;  %3124 = sst [smem:[#allocation43_spill]] %s2175_s20  ;;  %s2255_s7 = sld [smem:[#allocation3 + $0x41]] }
  0x81   : > { %1010 = vrot.lane.b32.xlu1 %v1930_v33, %s1735_s16  ;;  %1008 = vrot.lane.b32.xlu0 %v1932_v34, %s1735_s16  ;;  %s1516_s16 = sld [smem:[#allocation3 + $0x49]]  ;;  %3096 = sst [smem:[#allocation35_spill]] %s2090_s13 }
  0x82   : > { %v945_v12 = vcombine.low %v2033_v9, %v2036_v10  ;;  %s2184_s13 = sld [smem:[#allocation3 + $0x32]]  ;;  %3129 = sst [smem:[#allocation59_spill]] %s2186_s2 }
  0x83   : > { %v986_v16 = vstv %s1519_s15  ;;  %s2092_s15 = sld [smem:[#allocation3 + $0x4]]  ;;  %3133 = sst [smem:[#allocation61_spill]] %s2200_s27 }
  0x84   : > { %v2049_v17 = vmul.f32 %v986_v16, %v1932_v34  ;;  %v2052_v18 = vmul.f32 %v986_v16, %v1930_v33  ;;  %v627_v16 = vstv %s3123_s29  ;;  %3134 = sst [smem:[#allocation62_spill]] %s2202_s23  ;;  %s2213_s29 = sld [smem:[#allocation3 + $0x35]] }
  0x85   : > { %1063 = vrot.lane.b32.xlu1 %v1930_v33, %s1736_s18  ;;  %1061 = vrot.lane.b32.xlu0 %v1932_v34, %s1736_s18  ;;  %s2066_s18 = sld [smem:[#allocation3 + $0x8]]  ;;  %3095 = sst [smem:[#allocation34_spill]] %s2088_s5 }
  0x86   : > { %v991_v19 = vcombine.low %v2049_v17, %v2052_v18  ;;  %s2192_s5 = sld [smem:[#allocation3 + $0x33]]  ;;  %3135 = sst [smem:[#allocation63_spill]] %s2232_s11 }
  0x87   : > { %v917_v20 = vstv %s1516_s16  ;;  %s2094_s16 = sld [smem:[#allocation3 + $0xb]]  ;;  %3138 = sst [smem:[#allocation66_spill]] %s2255_s7 }
  0x88   : > { %v2057_v21 = vmul.f32 %v917_v20, %v1932_v34  ;;  %v2060_v22 = vmul.f32 %v917_v20, %v1930_v33  ;;  %3127 = sst [smem:[#allocation58_spill]] %s2184_s13  ;;  %v2224_v20 = vrot.slane %v371_v43, %v2139_v30  ;;  %s2262_s1 = sld [smem:[#allocation3 + $0x4e]]  ;;  %v2428_v13 = vrot.slane %v991_v19, %v2139_v30 }
  0x89   : > { %1116 = vrot.lane.b32.xlu1 %v1930_v33, %s1737_s19  ;;  %1114 = vrot.lane.b32.xlu0 %v1932_v34, %s1737_s19  ;;  %s2068_s19 = sld [smem:[#allocation3 + $0xf]]  ;;  %3097 = sst [smem:[#allocation36_spill]] %s2092_s15  ;;  %v284_v33 = vstv %s2064_s17 }
  0x8a   : > { %v922_v23 = vcombine.low %v2057_v21, %v2060_v22  ;;  %s2194_s17 = sld [smem:[#allocation3 + $0x3f]]  ;;  %s2234_s15 = sld [smem:[#allocation3 + $0x54]]  ;;  %3160 = vst [vmem:[#allocation87_spill] sm:$0xff] %v2428_v13 }
  0x8b   : > { %3084 = sst [smem:[#allocation23_spill]] %s2066_s18  ;;  %v288_v34 = vstv %s2066_s18  ;;  %s2159_s18 = sld [smem:[#allocation3 + $0x1c]] }
  0x8c   : > { %s2264_s10 = sld [smem:[#allocation3 + $0x5b]]  ;;  %s2269_s26 = sld [smem:[#allocation3 + $0x37]] }
  0x8d   : > { %3098 = sst [smem:[#allocation37_spill]] %s2094_s16  ;;  %s2288_s9 = sld [smem:[#allocation3 + $0x3e]] }
  0x8e   : > { %s2253_s16 = sld [smem:[#allocation3 + $0x3d]]  ;;  %3139 = sst [smem:[#allocation67_spill]] %s2262_s1 }
  0x8f   : > { %3085 = sst [smem:[#allocation24_spill]] %s2068_s19  ;;  %v292_v36 = vstv %s2068_s19  ;;  %s2161_s19 = sld [smem:[#allocation3 + $0x23]] }
  0x90   : > { %3132 = sst [smem:[#allocation60_spill]] %s2194_s17  ;;  %s2279_s28 = sld [smem:[#allocation3 + $0x55]] }
  0x91   : > { %3116 = sst [smem:[#allocation55_spill]] %s2159_s18  ;;  %s2292_s13 = sld [smem:[#allocation3 + $0x43]] }
  0x92   : > { %3136 = sst [smem:[#allocation64_spill]] %s2234_s15  ;;  %s2310_s2 = sld [smem:[#allocation3 + $0x4f]] }
  0x93   : > { %3140 = sst [smem:[#allocation68_spill]] %s2264_s10  ;;  %s2312_s20 = sld [smem:[#allocation3 + $0x56]] }
  0x94   : > { %3137 = sst [smem:[#allocation65_spill]] %s2253_s16  ;;  %s3144_s6 = sld [smem:[#allocation94_spill]] }
  0x95   : > { %3117 = sst [smem:[#allocation56_spill]] %s2161_s19  ;;  %s2324_s27 = sld [smem:[#allocation3 + $0x44]] }
  0x96   : > { %3141 = sst [smem:[#allocation69_spill]] %s2279_s28  ;;  %s2327_s17 = sld [smem:[#allocation3 + $0x51]] }
  0x97   : > { %s2336_s18 = sld [smem:[#allocation3 + $0x47]]  ;;  %s2342_s19 = sld [smem:[#allocation3 + $0x58]] }
  0x98   : > { %3142 = sst [smem:[#allocation70_spill]] %s2310_s2  ;;  %s2357_s15 = sld [smem:[#allocation3 + $0x45]] }
  0x99   : > { %3143 = sst [smem:[#allocation71_spill]] %s2312_s20  ;;  %s2359_s23 = sld [smem:[#allocation3 + $0x52]] }
  0x9a   : > { %v2317_v54 = vld [vmem:[%s3144_s6] sm:$0x3]  ;;  %s2334_s6 = sld [smem:[#allocation3 + $0x5c]]  ;;  %s2373_s7 = sld [smem:[#allocation3 + $0x59]] }
  0x9b   : > { %vm205_vm4 = vcmp.ge.s32.totalorder %v2317_v54, 2  ;;  %vm206_vm6 = vcmp.ge.s32.totalorder %v2317_v54, 1  ;;  %s2375_s11 = sld [smem:[#allocation3 + $0x5d]]  ;;  %s2386_s1 = sld [smem:[#allocation3 + $0x53]]  ;;  %vm207_vm9 = vcmp.lt.s32.totalorder %v2317_v54, 15  ;;  %vm208_vm10 = vcmp.lt.s32.totalorder %v2317_v54, 14 }
  0x9c   : > { %3145 = sst [smem:[#allocation72_spill]] %s2327_s17  ;;  %s2388_s16 = sld [smem:[#allocation3 + $0x5f]]  ;;  %vm209_vm11 = vcmp.lt.s32.totalorder %v2317_v54, 13  ;;  %vm204_vm12 = vcmp.ge.s32.totalorder %v2317_v54, 3 }
  0x9d   : > { %3147 = sst [smem:[#allocation74_spill]] %s2336_s18  ;;  %s3173_s17 = sld [smem:[#allocation33_spill]] }
  0x9e   : > { %3148 = sst [smem:[#allocation75_spill]] %s2342_s19  ;;  %s3174_s2 = sld [smem:[#allocation34_spill]] }
  0x9f   : > { %3150 = sst [smem:[#allocation77_spill]] %s2357_s15  ;;  %s3175_s15 = sld [smem:[#allocation35_spill]] }
  0xa0   : > { %3146 = sst [smem:[#allocation73_spill]] %s2334_s6  ;;  %s3178_s6 = sld [smem:[#allocation38_spill]] }
  0xa1   : > { %3151 = sst [smem:[#allocation78_spill]] %s2359_s23  ;;  %s3184_s10 = sld [smem:[#allocation41_spill]] }
  0xa2   : > { %3153 = sst [smem:[#allocation80_spill]] %s2373_s7  ;;  %s3179_s7 = sld [smem:[#allocation39_spill]] }
  0xa3   : > { %3154 = sst [smem:[#allocation81_spill]] %s2375_s11  ;;  %s3176_s11 = sld [smem:[#allocation36_spill]] }
  0xa4   : > { %3156 = sst [smem:[#allocation83_spill]] %s2386_s1  ;;  %s3205_s25 = sld [smem:[#allocation49_spill]] }
  0xa5   : > { %3157 = sst [smem:[#allocation84_spill]] %s2388_s16  ;;  %s3177_s16 = sld [smem:[#allocation37_spill]] }
  0xa6   : > { %s3182_s1 = sld [smem:[#allocation40_spill]]  ;;  %v3187_v19 = vstv %s3178_s6  ;;  %s3206_s20 = sld [smem:[#allocation50_spill]] }
  0xa7   : > { %s3207_s21 = sld [smem:[#allocation51_spill]]  ;;  %s3208_s28 = sld [smem:[#allocation52_spill]] }
  0xa8   : > { %v3189_v57 = vstv %s3179_s7  ;;  %s3216_s14 = sld [smem:[#allocation57_spill]]  ;;  %s3228_s3 = sld [smem:[#allocation43_spill]] }
  0xa9   : > { %s3230_s22 = sld [smem:[#allocation58_spill]]  ;;  %s3231_s18 = sld [smem:[#allocation44_spill]] }
  0xaa   : > { %s3233_s19 = sld [smem:[#allocation59_spill]]  ;;  %s3241_s6 = sld [smem:[#allocation65_spill]] }
  0xab   : > { %s3246_s7 = sld [smem:[#allocation63_spill]]  ;;  %s1739_s23 = smov 48  }
  0xad   : > { %v3221_v3 = vstv %s3208_s28  ;;  %s3288_s28 = sld [smem:[#allocation75_spill]] }
  0xcf   : > { %v258_v38 = vpop.permute.xlu1 %257  ;;  %v2247_v40 = vpop.permute.xlu0 %210 }
  0xd3   : > { %v312_v50 = vpop.permute.xlu0 %311  ;;  %v260_v51 = vpop.permute.xlu1 %259 }
  0xd4   : > { %v262_v55 = vsel %vm261_vm1, %v258_v38, %v260_v51  ;;  %v263_v62 = vsel %vm261_vm1, %v260_v51, %v258_v38 }
  0xd5   : > { %v266_v38 = vcombine.low %v263_v62, %v262_v55 }
  0xd7   : > { %v527_v44 = vpop.permute.xlu0 %526  ;;  %v314_v60 = vpop.permute.xlu1 %313  ;;  %v273_v6 = vrot.slane %v266_v38, %v2139_v30  ;;  %v2405_v38 = vrot.slane %v945_v12, %v2139_v30 }
  0xd8   : > { %v316_v1 = vsel %vm315_vm2, %v312_v50, %v314_v60  ;;  %v317_v2 = vsel %vm315_vm2, %v314_v60, %v312_v50  ;;  %v2381_v60 = vsub.s32 0, %v2118_v28 }
  0xd9   : > { %v320_v62 = vcombine.low %v317_v2, %v316_v1  ;;  %3158 = vst [vmem:[#allocation85_spill] sm:$0xff] %v2405_v38  ;;  %v280_v9 = vrot.slane %v273_v6, %v2139_v30  ;;  %v3217_v38 = vstv %s3205_s25  ;;  %s3285_s25 = sld [smem:[#allocation68_spill]] }
  0xda   : > { %3155 = vst [vmem:[#allocation82_spill] sm:$0xff] %v2381_v60 }
  0xdb   : > { %v327_v8 = vrot.slane %v320_v62, %v2139_v30  ;;  %v581_v50 = vpop.permute.xlu0 %580  ;;  %v529_v28 = vpop.permute.xlu1 %528  ;;  %v2412_v62 = vrot.slane %v968_v15, %v2139_v30 }
  0xdc   : > { %v531_v10 = vsel %vm530_vm3, %v527_v44, %v529_v28  ;;  %v532_v12 = vsel %vm530_vm3, %v529_v28, %v527_v44 }
  0xdd   : > { %3159 = vst [vmem:[#allocation86_spill] sm:$0xff] %v2412_v62  ;;  %v334_v14 = vrot.slane %v327_v8, %v2139_v30  ;;  %v535_v15 = vcombine.low %v531_v10, %v532_v12  ;;  %v282_v10 = vsel %vm205_vm4, %v280_v9, 0.0 }
  0xde   : > { %v285_v22 = vmul.f32 %v284_v33, %v282_v10  ;;  %v297_v51 = vmul.f32 %v296_v39, %v282_v10  ;;  %v2490_v33 = vmul.f32 %v304_v48, %v282_v10 }
  0xdf   : > { %v635_v1 = vpop.permute.xlu0 %634  ;;  %v583_v6 = vpop.permute.xlu1 %582  ;;  %v542_v18 = vrot.slane %v535_v15, %v2139_v30  ;;  %v336_v17 = vsel %vm206_vm6, %v334_v14, 0.0 }
  0xe0   : > { %v585_v12 = vsel %vm584_vm5, %v581_v50, %v583_v6  ;;  %v586_v7 = vsel %vm584_vm5, %v583_v6, %v581_v50  ;;  %v2460_v50 = vrot.slane %v922_v23, %v2139_v30  ;;  %v343_v39 = vmul.f32 %v342_v58, %v336_v17 }
  0xe1   : > { %v549_v15 = vrot.slane %v542_v18, %v2139_v30  ;;  %v589_v8 = vcombine.low %v585_v12, %v586_v7 }
  0xe2   : > { %3168 = vst [vmem:[#allocation88_spill] sm:$0xff] %v2460_v50 }
  0xe3   : > { %v637_v9 = vpop.permute.xlu1 %636  ;;  %v213_v28 = vpop.permute.xlu0 %212  ;;  %v596_v23 = vrot.slane %v589_v8, %v2139_v30  ;;  %v339_v8 = vmul.f32 %v338_v53, %v336_v17  ;;  %v2507_v53 = vmul.f32 %v346_v63, %v336_v17 }
  0xe4   : > { %v639_v14 = vsel %vm638_vm7, %v635_v1, %v637_v9  ;;  %v640_v7 = vsel %vm638_vm7, %v637_v9, %v635_v1  ;;  %v215_v6 = vsel %vm214_vm8, %v2247_v40, %v213_v28  ;;  %v216_v21 = vsel %vm214_vm8, %v213_v28, %v2247_v40 }
  0xe5   : > { %v643_v18 = vcombine.low %v639_v14, %v640_v7  ;;  %v219_v12 = vcombine.low %v216_v21, %v215_v6  ;;  %v289_v1 = vmul.f32 %v288_v34, %v282_v10  ;;  %v2480_v9 = vmul.f32 %v292_v36, %v282_v10 }
  0xe6   : > { %v2486_v40 = vmul.f32 %v300_v42, %v282_v10  ;;  %v2494_v28 = vmul.f32 %v308_v52, %v282_v10  ;;  %v603_v34 = vrot.slane %v596_v23, %v2139_v30  ;;  %v551_v42 = vsel %vm207_vm9, %v549_v15, 0.0 }
  0xe7   : > { %v691_v36 = vpop.permute.xlu1 %690  ;;  %v689_v14 = vpop.permute.xlu0 %688  ;;  %v650_v48 = vrot.slane %v643_v18, %v2139_v30  ;;  %v226_v52 = vrot.slane %v219_v12, %v2139_v30  ;;  %v351_v10 = vmul.f32 %v350_v4, %v336_v17  ;;  %v3180_v7 = vstv %s3173_s17  ;;  %s3201_s17 = sld [smem:[#allocation48_spill]] }
  0xe8   : > { %v2513_v6 = vmul.f32 %v3180_v7, %v336_v17  ;;  %v3181_v21 = vstv %s3174_s2  ;;  %v3183_v15 = vstv %s3175_s15  ;;  %v605_v18 = vsel %vm208_vm10, %v603_v34, 0.0  ;;  %s3214_s15 = sld [smem:[#allocation56_spill]]  ;;  %s3272_s2 = sld [smem:[#allocation69_spill]] }
  0xe9   : > { %v2517_v58 = vmul.f32 %v3181_v21, %v336_v17  ;;  %v2521_v23 = vmul.f32 %v3183_v15, %v336_v17  ;;  %v692_v63 = vsel %vm214_vm8, %v689_v14, %v691_v36  ;;  %v693_v4 = vsel %vm214_vm8, %v691_v36, %v689_v14 }
  0xea   : > { %v3185_v12 = vstv %s3176_s11  ;;  %v3186_v21 = vstv %s3177_s16  ;;  %v2539_v17 = vmul.f32 %v3187_v19, %v551_v42  ;;  %v657_v15 = vrot.slane %v650_v48, %v2139_v30  ;;  %s3234_s11 = sld [smem:[#allocation42_spill]]  ;;  %s3237_s16 = sld [smem:[#allocation61_spill]] }
  0xeb   : > { %v2531_v7 = vmul.f32 %v3185_v12, %v551_v42  ;;  %v2535_v2 = vmul.f32 %v3186_v21, %v551_v42  ;;  %v744_v34 = vpop.permute.xlu1 %743  ;;  %v742_v44 = vpop.permute.xlu0 %741  ;;  %v2544_v59 = vmul.f32 %v3189_v57, %v551_v42  ;;  %v3191_v36 = vstv %s2100_s30  ;;  %s3198_s30 = sld [smem:[#allocation46_spill]] }
  0xec   : > { %v2548_v14 = vmul.f32 %v3191_v36, %v551_v42  ;;  %v3192_v12 = vstv %s2102_s24  ;;  %v233_v19 = vrot.slane %v226_v52, %v2139_v30  ;;  %v3193_v21 = vstv %s3182_s1  ;;  %s3200_s24 = sld [smem:[#allocation47_spill]]  ;;  %s3248_s1 = sld [smem:[#allocation66_spill]] }
  0xed   : > { %3190 = vst [vmem:[#allocation89_spill] sm:$0xff] %v2544_v59  ;;  %v2552_v55 = vmul.f32 %v3192_v12, %v551_v42  ;;  %v2557_v56 = vmul.f32 %v3193_v21, %v551_v42  ;;  %v3195_v48 = vstv %s3184_s10  ;;  %v2565_v57 = vmul.f32 %v3196_v47, %v605_v18  ;;  %s3265_s10 = sld [smem:[#allocation64_spill]] }
  0xee   : > { %v2561_v46 = vmul.f32 %v3195_v48, %v605_v18  ;;  %v696_v36 = vcombine.low %v693_v4, %v692_v63  ;;  %v2569_v12 = vmul.f32 %v3199_v25, %v605_v18  ;;  %v659_v52 = vsel %vm209_vm11, %v657_v15, 0.0 }
  0xef   : > { %3194 = vst [vmem:[#allocation90_spill] sm:$0xff] %v2557_v56  ;;  %v745_v42 = vsel %vm261_vm1, %v742_v44, %v744_v34  ;;  %v746_v21 = vsel %vm261_vm1, %v744_v34, %v742_v44  ;;  %v3202_v48 = vstv %s3121_s4  ;;  %v3204_v47 = vstv %s3122_s8  ;;  %v797_v4 = vpop.permute.xlu1 %796  ;;  %v795_v15 = vpop.permute.xlu0 %794  ;;  %s3210_s4 = sld [smem:[#allocation53_spill]]  ;;  %s3212_s8 = sld [smem:[#allocation55_spill]] }
  0xf0   : > { %v2579_v43 = vmul.f32 %v3202_v48, %v605_v18  ;;  %v2583_v27 = vmul.f32 %v3204_v47, %v605_v18  ;;  %v2587_v63 = vmul.f32 %v627_v16, %v605_v18  ;;  %v235_v25 = vsel %vm204_vm12, %v233_v19, 0.0 }
  0xf1   : > { %v2593_v44 = vmul.f32 %v631_v11, %v605_v18  ;;  %v238_v34 = vmul.f32 %v237_v32, %v235_v25  ;;  %v241_v48 = vmul.f32 %v240_v35, %v235_v25  ;;  %v247_v16 = vmul.f32 %v246_v41, %v235_v25 }
  0xf2   : > { %3203 = vst [vmem:[#allocation91_spill] sm:$0xff] %v2579_v43  ;;  %v3211_v47 = vstv %s3198_s30  ;;  %v3213_v50 = vstv %s3200_s24  ;;  %v703_v43 = vrot.slane %v696_v36, %v2139_v30  ;;  %v749_v62 = vcombine.low %v746_v21, %v745_v42  ;;  %s3276_s30 = sld [smem:[#allocation78_spill]]  ;;  %s3279_s24 = sld [smem:[#allocation71_spill]] }
  0xf3   : > { %3209 = vst [vmem:[#allocation92_spill] sm:$0xff] %v2593_v44  ;;  %v662_v13 = vmul.f32 %v3211_v47, %v659_v52  ;;  %v2605_v19 = vmul.f32 %v3213_v50, %v659_v52  ;;  %v3215_v59 = vstv %s3201_s17  ;;  %v286_v32 = vadd.f32 %v285_v22, %v238_v34  ;;  %v1011_v42 = vpop.permute.xlu1 %1010  ;;  %v1009_v21 = vpop.permute.xlu0 %1008  ;;  %s3284_s17 = sld [smem:[#allocation83_spill]] }
  0xf4   : > { %v2610_v11 = vmul.f32 %v3215_v59, %v659_v52  ;;  %v290_v18 = vadd.f32 %v289_v1, %v241_v48  ;;  %v298_v35 = vadd.f32 %v297_v51, %v247_v16  ;;  %v2614_v44 = vmul.f32 %v3217_v38, %v659_v52 }
  0xf5   : > { %v3219_v41 = vstv %s3206_s20  ;;  %v3220_v47 = vstv %s3207_s21  ;;  %v2626_v36 = vmul.f32 %v3221_v3, %v659_v52  ;;  %v3222_v0 = vstv %s3210_s4  ;;  %s2828_s20 = sld [smem:[#allocation3 + $0x60]]  ;;  %s2830_s21 = sld [smem:[#allocation3 + $0x61]] }
  0xf6   : > { %3218 = vst [vmem:[#allocation93_spill] sm:$0xff] %v2614_v44  ;;  %v2618_v56 = vmul.f32 %v3219_v41, %v659_v52  ;;  %v2622_v50 = vmul.f32 %v3220_v47, %v659_v52  ;;  %v244_v59 = vmul.f32 %v3222_v0, %v235_v25  ;;  %v3223_v60 = vstv %s3212_s8  ;;  %s3290_s4 = sld [smem:[#allocation80_spill]]  ;;  %s1740_s8 = smov 32  }
  0xf7   : > { %v250_v22 = vmul.f32 %v3223_v60, %v235_v25  ;;  %v340_v1 = vadd.f32 %v339_v8, %v286_v32  ;;  %v352_v51 = vadd.f32 %v351_v10, %v298_v35  ;;  %v3224_v34 = vstv %s3214_s15  ;;  %s3291_s15 = sld [smem:[#allocation73_spill]] }
  0xf8   : > { %v253_v38 = vmul.f32 %v3224_v34, %v235_v25  ;;  %v3225_v48 = vstv %s3216_s14  ;;  %v344_v41 = vadd.f32 %v343_v39, %v290_v18  ;;  %v710_v44 = vrot.slane %v703_v43, %v2139_v30  ;;  %v1064_v39 = vpop.permute.xlu1 %1063  ;;  %s3298_s14 = sld [smem:[#allocation81_spill]] }
  0xf9   : > { %v256_v16 = vmul.f32 %v3225_v48, %v235_v25  ;;  %v3226_v47 = vrot.slane %v2211_v26, %v2139_v30  ;;  %v756_v52 = vrot.slane %v749_v62, %v2139_v30  ;;  %v798_v0 = vsel %vm315_vm2, %v795_v15, %v797_v4  ;;  %v1062_v25 = vpop.permute.xlu0 %1061 }
  0xfa   : > { %v799_v60 = vsel %vm315_vm2, %v797_v4, %v795_v15  ;;  %v1012_v10 = vsel %vm530_vm3, %v1009_v21, %v1011_v42  ;;  %v1013_v43 = vsel %vm530_vm3, %v1011_v42, %v1009_v21  ;;  %v3227_v26 = vrot.slane %v2224_v20, %v2139_v30 }
  0xfb   : > { %v2640_v3 = vadd.f32 %v3226_v47, %v352_v51  ;;  %v802_v8 = vcombine.low %v799_v60, %v798_v0  ;;  %v763_v62 = vrot.slane %v756_v52, %v2139_v30  ;;  %v1016_v18 = vcombine.low %v1012_v10, %v1013_v43 }
  0xfc   : > { %v387_v32 = vadd.f32 %v3227_v26, %v340_v1  ;;  %v1065_v35 = vsel %vm584_vm5, %v1062_v25, %v1064_v39  ;;  %v1066_v4 = vsel %vm584_vm5, %v1064_v39, %v1062_v25  ;;  %v294_v15 = vadd.f32 %v2480_v9, %v244_v59 }
  0xfd   : > { %v809_v51 = vrot.slane %v802_v8, %v2139_v30  ;;  %v1069_v42 = vcombine.low %v1065_v35, %v1066_v4  ;;  %v302_v34 = vadd.f32 %v2486_v40, %v250_v22  ;;  %v2665_v20 = vsel %vm204_vm12, %v710_v44, 0.0  ;;  %v1117_v40 = vpop.permute.xlu1 %1116  ;;  %v1115_v22 = vpop.permute.xlu0 %1114 }
  0xfe   : > { %v555_v21 = vadd.f32 %v2531_v7, %v387_v32  ;;  %v1023_v1 = vrot.slane %v1016_v18, %v2139_v30  ;;  %v3229_v48 = vrot.slane %v2230_v31, %v2139_v30  ;;  %v2673_v9 = vsel %vm205_vm4, %v763_v62, 0.0 }
  0xff   : > { %v816_v59 = vrot.slane %v809_v51, %v2139_v30  ;;  %v1076_v7 = vrot.slane %v1069_v42, %v2139_v30  ;;  %v1118_v0 = vsel %vm638_vm7, %v1115_v22, %v1117_v40  ;;  %v1119_v31 = vsel %vm638_vm7, %v1117_v40, %v1115_v22 }
 0x100   : > { %v410_v47 = vadd.f32 %v3229_v48, %v344_v41  ;;  %v609_v44 = vadd.f32 %v2561_v46, %v555_v21  ;;  %v1030_v52 = vrot.slane %v1023_v1, %v2139_v30  ;;  %v348_v60 = vadd.f32 %v2507_v53, %v294_v15 }
 0x101   : > { %v1122_v8 = vcombine.low %v1118_v0, %v1119_v31  ;;  %v3232_v43 = vstv %s3228_s3  ;;  %v306_v39 = vadd.f32 %v2490_v33, %v253_v38  ;;  %v2691_v25 = vsel %vm206_vm6, %v816_v59, 0.0  ;;  %s2858_s3 = sld [smem:[#allocation3 + $0x4a]] }
 0x102   : > { %v559_v41 = vadd.f32 %v2535_v2, %v410_v47  ;;  %v663_v10 = vadd.f32 %v662_v13, %v609_v44  ;;  %v715_v46 = vmul.f32 %v3232_v43, %v2665_v20  ;;  %v1083_v26 = vrot.slane %v1076_v7, %v2139_v30 }
 0x103   : > { %v310_v2 = vadd.f32 %v2494_v28, %v256_v16  ;;  %v1129_v53 = vrot.slane %v1122_v8, %v2139_v30  ;;  %v3235_v62 = vstv %s3230_s22  ;;  %v356_v33 = vadd.f32 %v2513_v6, %v302_v34  ;;  %s3304_s22 = sld [smem:[#allocation74_spill]] }
 0x104   : > { %v613_v32 = vadd.f32 %v2565_v57, %v559_v41  ;;  %v716_v13 = vadd.f32 %v715_v46, %v663_v10  ;;  %v768_v18 = vmul.f32 %v3235_v62, %v2673_v9  ;;  %v2703_v38 = vsel %vm207_vm9, %v1030_v52, 0.0 }
 0x105   : > { %v3236_v57 = vstv %s3231_s18  ;;  %v1136_v28 = vrot.slane %v1129_v53, %v2139_v30  ;;  %v3238_v15 = vstv %s2192_s5  ;;  %v3239_v6 = vrot.slane %v2245_v37, %v2139_v30  ;;  %s3242_s5 = sld [smem:[#allocation60_spill]]  ;;  %s2870_s18 = sld [smem:[#allocation3 + $0x4b]] }
 0x106   : > { %v667_v35 = vadd.f32 %v2605_v19, %v613_v32  ;;  %v719_v4 = vmul.f32 %v3236_v57, %v2665_v20  ;;  %v769_v16 = vadd.f32 %v768_v18, %v716_v13  ;;  %v821_v51 = vmul.f32 %v3238_v15, %v2691_v25 }
 0x107   : > { %v433_v42 = vadd.f32 %v3239_v6, %v348_v60  ;;  %v360_v21 = vadd.f32 %v2517_v58, %v306_v39  ;;  %v2719_v19 = vsel %vm208_vm10, %v1083_v26, 0.0  ;;  %v3240_v1 = vstv %s3233_s19  ;;  %s2872_s19 = sld [smem:[#allocation3 + $0x4c]] }
 0x108   : > { %v720_v34 = vadd.f32 %v719_v4, %v667_v35  ;;  %v772_v48 = vmul.f32 %v3240_v1, %v2673_v9  ;;  %v364_v47 = vadd.f32 %v2521_v23, %v310_v2  ;;  %v3243_v59 = vstv %s3234_s11  ;;  %s3305_s11 = sld [smem:[#allocation84_spill]] }
 0x109   : > { %v2728_v7 = vmul.f32 %v3243_v59, %v2665_v20  ;;  %v822_v37 = vadd.f32 %v821_v51, %v769_v16  ;;  %v563_v58 = vadd.f32 %v2539_v17, %v433_v42  ;;  %v2733_v40 = vsel %vm209_vm11, %v1136_v28, 0.0 }
 0x10a   : > { %v3244_v22 = vstv %s2213_s29  ;;  %v773_v52 = vadd.f32 %v772_v48, %v720_v34  ;;  %v3245_v0 = vstv %s3237_s16  ;;  %v3247_v31 = vrot.slane %v2285_v45, %v2139_v30  ;;  %s2765_s29 = sld [smem:[#allocation3 + $0x48]]  ;;  %s1741_s16 = smov 16  }
 0x10b   : > { %v1035_v44 = vmul.f32 %v3244_v22, %v2703_v38  ;;  %v825_v23 = vmul.f32 %v3245_v0, %v2691_v25  ;;  %v3249_v60 = vstv %s2239_s12  ;;  %v617_v54 = vadd.f32 %v2569_v12, %v563_v58  ;;  %s3261_s12 = sld [smem:[#allocation67_spill]] }
 0x10c   : > { %v869_v41 = vadd.f32 %v3247_v31, %v822_v37  ;;  %v1088_v17 = vmul.f32 %v3249_v60, %v2719_v19  ;;  %v3250_v8 = vrot.slane %v2277_v24, %v2139_v30  ;;  %v3251_v46 = vstv %s2215_s0  ;;  %s3256_s0 = sld [smem:[#allocation62_spill]] }
 0x10d   : > { %v826_v43 = vadd.f32 %v825_v23, %v773_v52  ;;  %v1039_v39 = vmul.f32 %v3251_v46, %v2703_v38  ;;  %v3252_v26 = vstv %s3241_s6  ;;  %v3253_v45 = vstv %s3242_s5  ;;  %s1742_s6 = smov 112   ;;  %s1743_s5 = smov 96  }
 0x10e   : > { %v479_v10 = vadd.f32 %v3250_v8, %v356_v33  ;;  %v1092_v32 = vmul.f32 %v3252_v26, %v2719_v19  ;;  %v723_v2 = vmul.f32 %v3253_v45, %v2665_v20  ;;  %v1036_v53 = vadd.f32 %v1035_v44, %v869_v41 }
 0x10f   : > { %v3254_v12 = vstv %s2269_s26  ;;  %v671_v24 = vadd.f32 %v2610_v11, %v617_v54  ;;  %v3255_v18 = vrot.slane %v2307_v61, %v2139_v30  ;;  %v3257_v35 = vstv %s3246_s7  ;;  %s3260_s26 = sld [smem:[#allocation77_spill]]  ;;  %s1744_s7 = smov 80  }
 0x110   : > { %v1141_v13 = vmul.f32 %v3254_v12, %v2733_v40  ;;  %v571_v62 = vadd.f32 %v2548_v14, %v479_v10  ;;  %v776_v57 = vmul.f32 %v3257_v35, %v2673_v9  ;;  %v3258_v4 = vstv %s3248_s1  ;;  %v3283_v35 = vld [vmem:[#allocation90_spill] sm:$0xff]  ;;  %s3313_s1 = sld [smem:[#allocation15_spill]] }
 0x111   : > { %v892_v33 = vadd.f32 %v3255_v18, %v826_v43  ;;  %v829_v28 = vmul.f32 %v3258_v4, %v2691_v25  ;;  %v3259_v16 = vrot.slane %v2298_v49, %v2139_v30  ;;  %v1089_v14 = vadd.f32 %v1088_v17, %v1036_v53 }
 0x112   : > { %v724_v15 = vadd.f32 %v723_v2, %v671_v24  ;;  %v3262_v51 = vstv %s2292_s13  ;;  %v625_v61 = vadd.f32 %v2583_v27, %v571_v62  ;;  %v3263_v34 = vstv %s2288_s9  ;;  %s2794_s13 = sld [smem:[#allocation3 + $0x5a]]  ;;  %s3270_s9 = sld [smem:[#allocation72_spill]] }
 0x113   : > { %v502_v11 = vadd.f32 %v3259_v16, %v360_v21  ;;  %v1043_v6 = vmul.f32 %v3262_v51, %v2703_v38  ;;  %v1040_v42 = vadd.f32 %v1039_v39, %v892_v33  ;;  %v1145_v1 = vmul.f32 %v3263_v34, %v2733_v40  ;;  %v3274_v39 = vld [vmem:[#allocation76_spill] sm:$0xff]  ;;  %v3289_v34 = vld [vmem:[#allocation92_spill] sm:$0xff] }
 0x114   : > { %v3264_v48 = vstv %s2324_s27  ;;  %v1142_v49 = vadd.f32 %v1141_v13, %v1089_v14  ;;  %v777_v21 = vadd.f32 %v776_v57, %v724_v15  ;;  %v679_v58 = vadd.f32 %v2618_v56, %v625_v61  ;;  %s3269_s27 = sld [smem:[#allocation70_spill]]  ;;  %v3271_v56 = vld [vmem:[#allocation82_spill] sm:$0xff] }
 0x115   : > { %v1096_v59 = vmul.f32 %v3264_v48, %v2719_v19  ;;  %v575_v37 = vadd.f32 %v2552_v55, %v502_v11  ;;  %v3266_v22 = vstv %s3256_s0  ;;  %v1093_v27 = vadd.f32 %v1092_v32, %v1040_v42  ;;  %v3292_v48 = vld [vmem:[#allocation85_spill] sm:$0xff]  ;;  %s3315_s0 = sld [smem:[#allocation21_spill]] }
 0x116   : > { %v731_v44 = vmul.f32 %v3266_v22, %v2665_v20  ;;  %v3267_v52 = vstv %s3260_s26  ;;  %v3268_v23 = vstv %s3261_s12  ;;  %v1175_v41 = vrot.slane %v1142_v49, %v2384_v5  ;;  %s3316_s26 = sld [smem:[#allocation18_spill]]  ;;  %s1549_s12 = sshll.u32 %s3313_s1, 7 }
 0x117   : > { %v1149_v0 = vmul.f32 %v3267_v52, %v2733_v40  ;;  %v784_v31 = vmul.f32 %v3268_v23, %v2673_v9  ;;  %v629_v55 = vadd.f32 %v2587_v63, %v575_v37  ;;  %v1171_v60 = vrot.slane %v1142_v49, %v3271_v56  ;;  %v3277_v63 = vld [vmem:[#allocation79_spill] sm:$0xff] }
 0x118   : > { %v830_v17 = vadd.f32 %v829_v28, %v777_v21  ;;  %v732_v54 = vadd.f32 %v731_v44, %v679_v58  ;;  %v1146_v8 = vadd.f32 %v1145_v1, %v1093_v27  ;;  %v3273_v43 = vstv %s3265_s10  ;;  %1180 = vrot.lane.b32.xlu1 %v1175_v41, %s1739_s23 }
 0x119   : > { %v683_v10 = vadd.f32 %v2622_v50, %v629_v55  ;;  %v735_v46 = vmul.f32 %v3273_v43, %v2665_v20  ;;  %v3275_v26 = vrot.slane %v3274_v39, %v2139_v30  ;;  %1178 = vrot.lane.b32.xlu0 %v1171_v60, %s1739_s23  ;;  %v3278_v45 = vrot.slane %v3277_v63, %v2139_v30  ;;  %s3318_s23 = sld [smem:[#allocation96_spill]] }
 0x11a   : > { %v785_v53 = vadd.f32 %v784_v31, %v732_v54  ;;  %v3280_v12 = vstv %s3269_s27  ;;  %v832_v13 = vstv %s2765_s29  ;;  %v3281_v24 = vstv %s3270_s9  ;;  %v3296_v31 = vld [vmem:[#allocation89_spill] sm:$0xff]  ;;  %s3314_s29 = sld [smem:[#allocation20_spill]] }
 0x11b   : > { %v525_v32 = vadd.f32 %v3275_v26, %v364_v47  ;;  %v915_v2 = vadd.f32 %v3278_v45, %v830_v17  ;;  %v837_v50 = vmul.f32 %v3280_v12, %v2691_v25  ;;  %v1051_v62 = vmul.f32 %v3281_v24, %v2703_v38  ;;  %v3307_v24 = vld [vmem:[#allocation93_spill] sm:$0xff] }
 0x11c   : > { %v736_v18 = vadd.f32 %v735_v46, %v683_v10  ;;  %v3282_v47 = vstv %s3272_s2  ;;  %v1197_v4 = vrot.slane %v1146_v8, %v2384_v5  ;;  %v1193_v28 = vrot.slane %v1146_v8, %v3271_v56  ;;  %v3300_v10 = vld [vmem:[#allocation86_spill] sm:$0xff]  ;;  %p3320_p0 = scmp.ne.s32.totalorder %s3316_s26, 0 }
 0x11d   : > { %v788_v33 = vmul.f32 %v3282_v47, %v2673_v9  ;;  %v579_v57 = vadd.f32 %v3283_v35, %v525_v32  ;;  %v1044_v16 = vadd.f32 %v1043_v6, %v915_v2  ;;  %v838_v11 = vadd.f32 %v837_v50, %v785_v53 }
 0x11e   : > { %v3286_v14 = vstv %s3276_s30  ;;  %v3287_v61 = vstv %s3279_s24  ;;  %1202 = vrot.lane.b32.xlu1 %v1197_v4, %s1740_s8  ;;  %1200 = vrot.lane.b32.xlu0 %v1193_v28, %s1740_s8  ;;  %v3293_v37 = vrot.slane %v3292_v48, %v2139_v30  ;;  %v567_v55 = vadd.f32 %v3296_v31, %v2640_v3  ;;  %v3303_v3 = vld [vmem:[#allocation91_spill] sm:$0xff] }
 0x11f   : > { %v1104_v15 = vmul.f32 %v3286_v14, %v2719_v19  ;;  %v789_v51 = vadd.f32 %v788_v33, %v736_v18  ;;  %v841_v42 = vmul.f32 %v3287_v61, %v2691_v25  ;;  %v633_v1 = vadd.f32 %v3289_v34, %v579_v57  ;;  %v3310_v61 = vld [vmem:[#allocation88_spill] sm:$0xff]  ;;  %s3319_s30 = smov %s3318_s23  ;;  %s2928_s24 = scalar_lea.hbm %s3318_s23, %s1549_s12 }
 0x120   : > { %v1097_v6 = vadd.f32 %v1096_v59, %v1044_v16  ;;  %v961_v49 = vadd.f32 %v3293_v37, %v838_v11  ;;  %v3294_v21 = vstv %s3284_s17  ;;  %v1160_v22 = vstv %s2794_s13  ;;  %s3317_s10 = sshll.u32 %s3314_s29, 3  ;;  %s1351_s17 = scalar_lea.sflag [#allocation6], %s3314_s29 }
 0x121   : > { %v1157_v58 = vmul.f32 %v3294_v21, %v2733_v40  ;;  %v842_v44 = vadd.f32 %v841_v42, %v789_v51  ;;  %v687_v27 = vadd.f32 %v2626_v36, %v633_v1  ;;  %v3295_v52 = vstv %s3285_s25  ;;  %v3311_v1 = vld [vmem:[#allocation87_spill] sm:$0xff]  ;;  %s164_s13 = scalar_lea.vmem [#allocation7], %s3317_s10 }
 0x122   : > { %v739_v23 = vmul.f32 %v3295_v52, %v2665_v20  ;;  %v1150_v41 = vadd.f32 %v1149_v0, %v1097_v6  ;;  %v1052_v60 = vadd.f32 %v1051_v62, %v961_v49  ;;  %v3297_v59 = vstv %s3288_s28  ;;  %s1365_s27 = sshll.u32 %s164_s13, 4  ;;  %s2930_s27 = int_to_ptr.vmem [resolvable:$true] %s1365_s27 }
 0x123   : > { %v1055_v17 = vmul.f32 %v3297_v59, %v2703_v38  ;;  %v3299_v54 = vstv %s3290_s4  ;;  %v3301_v36 = vrot.slane %v3300_v10, %v2139_v30  ;;  %v3302_v20 = vstv %s3291_s15  ;;  %s1660_s25 = scalar_lea.vmem %s2930_s27, 128 }
 0x124   : > { %v1108_v8 = vmul.f32 %v3299_v54, %v2719_v19  ;;  %v740_v46 = vadd.f32 %v739_v23, %v687_v27  ;;  %v792_v39 = vmul.f32 %v3302_v20, %v2673_v9  ;;  %v621_v0 = vadd.f32 %v3303_v3, %v567_v55  ;;  %p1661_p9 = scmp.ne.s32.totalorder %s2930_s27, %s1660_s25 }
 0x125   : > { %v984_v43 = vadd.f32 %v3301_v36, %v842_v44  ;;  %v1221_v26 = vrot.slane %v1150_v41, %v2384_v5  ;;  %v1217_v32 = vrot.slane %v1150_v41, %v3271_v56  ;;  %v1105_v63 = vadd.f32 %v1104_v15, %v1052_v60 }
 0x126   : > { %v1161_v45 = vmul.f32 %v1160_v22, %v2733_v40  ;;  %v793_v53 = vadd.f32 %v792_v39, %v740_v46  ;;  %v3306_v12 = vstv %s3298_s14  ;;  %v675_v62 = vadd.f32 %v3307_v24, %v621_v0  ;;  %p1662_p1 = pnand %p1661_p9, %p3320_p0 }
 0x127   : > { %v1056_v2 = vadd.f32 %v1055_v17, %v984_v43  ;;  %v845_v50 = vmul.f32 %v3306_v12, %v2691_v25  ;;  %1226 = vrot.lane.b32.xlu1 %v1221_v26, %s1741_s16  ;;  %1224 = vrot.lane.b32.xlu0 %v1217_v32, %s1741_s16  ;;  %v1158_v18 = vadd.f32 %v1157_v58, %v1105_v63  ;;  %v1111_v47 = vstv %s2828_s20  ;;  %s1745_s20 = smov [#allocation7]  }
 0x128   : > { %v1164_v33 = vstv %s2830_s21  ;;  %v728_v4 = vadd.f32 %v2728_v7, %v675_v62  ;;  %v3308_v28 = vstv %s3304_s22  ;;  %v3309_v15 = vstv %s3305_s11  ;;  %p1663_p2 = pneg %p1662_p1  ;;  %s1664_s21 = sshll.u32 %s1745_s20, 4  ;;  %s1665_s21 = int_to_ptr.vmem [resolvable:$false] %s1664_s21 }
 0x129   : > { %v1109_v35 = vadd.f32 %v1108_v8, %v1056_v2  ;;  %v846_v57 = vadd.f32 %v845_v50, %v793_v53  ;;  %v780_v16 = vmul.f32 %v3308_v28, %v2673_v9  ;;  %v1258_v11 = vrot.slane %v1158_v18, %v2384_v5  ;;  %s1666_s28 = scalar_lea.vmem %s1665_s21, 256  ;;  %p1667_p10 = scmp.lt.s32.totalorder %s2930_s27, %s1665_s21 }
 0x12a   : > { %v1254_v14 = vrot.slane %v1158_v18, %v3271_v56  ;;  %v1059_v51 = vmul.f32 %v3309_v15, %v2703_v38  ;;  %v936_v42 = vrot.slane %v3310_v61, %v2139_v30  ;;  %v3312_v6 = vrot.slane %v3311_v1, %v2139_v30  ;;  %p1668_p13 = scmp.lt.s32.totalorder %s1666_s28, %s1660_s25 }
 0x12b   : > { %v1162_v34 = vadd.f32 %v1161_v45, %v1109_v35  ;;  %v781_v48 = vadd.f32 %v780_v16, %v728_v4  ;;  %v833_v9 = vmul.f32 %v832_v13, %v2691_v25  ;;  %1263 = vrot.lane.b32.xlu1 %v1258_v11, %s1742_s6  ;;  %v1046_v37 = vstv %s2858_s3 }
 0x12c   : > { %v1007_v7 = vadd.f32 %v3312_v6, %v846_v57  ;;  %1261 = vrot.lane.b32.xlu0 %v1254_v14, %s1742_s6  ;;  %v1112_v21 = vmul.f32 %v1111_v47, %v2719_v19  ;;  %v1165_v58 = vmul.f32 %v1164_v33, %v2733_v40  ;;  %v1099_v52 = vstv %s2870_s18  ;;  %p1669_p5 = por %p1668_p13, %p1667_p10 }
 0x12d   : > { %v834_v22 = vadd.f32 %v833_v9, %v781_v48  ;;  %v1282_v44 = vrot.slane %v1162_v34, %v2384_v5  ;;  %v1278_v27 = vrot.slane %v1162_v34, %v3271_v56  ;;  %v1152_v30 = vstv %s2872_s19 }
 0x12e   : > { %v1060_v49 = vadd.f32 %v1059_v51, %v1007_v7  ;;  %v1047_v25 = vmul.f32 %v1046_v37, %v2703_v38  ;;  %v1100_v41 = vmul.f32 %v1099_v52, %v2719_v19  ;;  %v1153_v60 = vmul.f32 %v1152_v30, %v2733_v40  ;;  %p1670_p7 = pnand %p1669_p5, %p1663_p2 }
 0x12f   : > { %v938_v31 = vadd.f32 %v936_v42, %v834_v22  ;;  %1287 = vrot.lane.b32.xlu1 %v1282_v44, %s1743_s5  ;;  %vm1228_vm1 = vcmp.lt.s32.totalorder %v2136_v29, 16  ;;  %vm1231_vm2 = vcmp.ge.s32.totalorder %v2136_v29, 16  ;;  %v202_v12 = vadd.s32 128, %v2136_v29 }
 0x130   : > { %v1113_v23 = vadd.f32 %v1112_v21, %v1060_v49  ;;  %1285 = vrot.lane.b32.xlu0 %v1278_v27, %s1743_s5  ;;  %vm1265_vm3 = vcmp.lt.s32.totalorder %v2136_v29, 112  ;;  %vm1289_vm5 = vcmp.lt.s32.totalorder %v2136_v29, 96  ;;  %vm1313_vm7 = vcmp.lt.s32.totalorder %v2136_v29, 80 }
 0x131   : > { %v1048_v55 = vadd.f32 %v1047_v25, %v938_v31  ;;  %vm1269_vm4 = vcmp.lt.s32.totalorder %v202_v12, 240  ;;  %vm1293_vm6 = vcmp.lt.s32.totalorder %v202_v12, 224  ;;  %vm1317_vm8 = vcmp.lt.s32.totalorder %v202_v12, 208 }
 0x132   : > { %v1166_v13 = vadd.f32 %v1165_v58, %v1113_v23 }
 0x133   : > { %v1101_v54 = vadd.f32 %v1100_v41, %v1048_v55 }
 0x134   : > { %v1306_v59 = vrot.slane %v1166_v13, %v2384_v5  ;;  %v1302_v17 = vrot.slane %v1166_v13, %v3271_v56 }
 0x135   : > { %v1154_v8 = vadd.f32 %v1153_v60, %v1101_v54  ;;  %v1619_v60 = vld [vmem:[%s3315_s0] sm:$0xff] }
 0x136   : > { %1311 = vrot.lane.b32.xlu1 %v1306_v59, %s1744_s7  ;;  %1309 = vrot.lane.b32.xlu0 %v1302_v17, %s1744_s7 }
 0x137   : > { %v1245_v38 = vrot.slane %v1154_v8, %v2384_v5  ;;  %v1241_v24 = vrot.slane %v1154_v8, %v3271_v56 }
 0x18a   : > { %v1181_v10 = vpop.permute.xlu1 %1180 }
 0x18b   : > { %v1179_v36 = vpop.permute.xlu0 %1178 }
 0x18c   : > { %v1184_v46 = vsel %vm1182_vm14, %v1181_v10, %v1179_v36  ;;  %v1183_v26 = vsel %vm1182_vm14, %v1179_v36, %v1181_v10 }
 0x18d   : > { %v1187_v5 = vsel %vm1185_vm0, %v1184_v46, 0.0 }
 0x190   : > { %v1203_v19 = vpop.permute.xlu1 %1202  ;;  %v1201_v43 = vpop.permute.xlu0 %1200 }
 0x191   : > { %v1206_v40 = vsel %vm1204_vm13, %v1203_v19, %v1201_v43  ;;  %v1205_v39 = vsel %vm1204_vm13, %v1201_v43, %v1203_v19 }
 0x192   : > { %v1209_v20 = vsel %vm1207_vm15, %v1206_v40, 0.0  ;;  %v1212_v2 = vadd.f32 %v1205_v39, %v1183_v26 }
 0x193   : > { %v1211_v32 = vadd.f32 %v1209_v20, %v1187_v5 }
 0x199   : > { %v1227_v3 = vpop.permute.xlu1 %1226  ;;  %v1225_v0 = vpop.permute.xlu0 %1224 }
 0x19a   : > { %v1229_v63 = vsel %vm1228_vm1, %v1225_v0, %v1227_v3  ;;  %v1230_v45 = vsel %vm1228_vm1, %v1227_v3, %v1225_v0 }
 0x19b   : > { %v1233_v53 = vsel %vm1231_vm2, %v1230_v45, 0.0  ;;  %v1236_v62 = vadd.f32 %v1229_v63, %v1212_v2 }
 0x19c   : > { %v1235_v50 = vadd.f32 %v1233_v53, %v1211_v32 }
 0x19d   : > { %v1264_v18 = vpop.permute.xlu1 %1263  ;;  %v1249_v4 = vadd.f32 %v1245_v38, %v1236_v62 }
 0x19e   : > { %v1262_v47 = vpop.permute.xlu0 %1261  ;;  %v1248_v33 = vadd.f32 %v1241_v24, %v1235_v50 }
 0x19f   : > { %v1266_v35 = vsel %vm1265_vm3, %v1262_v47, %v1264_v18  ;;  %v1267_v57 = vsel %vm1265_vm3, %v1264_v18, %v1262_v47 }
 0x1a0   : > { %v1271_v11 = vsel %vm1269_vm4, %v1267_v57, 0.0  ;;  %v1272_v14 = vadd.f32 %v1266_v35, %v1248_v33 }
 0x1a1   : > { %v1288_v28 = vpop.permute.xlu1 %1287  ;;  %v1273_v42 = vadd.f32 %v1271_v11, %v1249_v4 }
 0x1a2   : > { %v1286_v16 = vpop.permute.xlu0 %1285 }
 0x1a3   : > { %v1291_v15 = vsel %vm1289_vm5, %v1288_v28, %v1286_v16  ;;  %v1290_v51 = vsel %vm1289_vm5, %v1286_v16, %v1288_v28 }
 0x1a4   : > { %v1295_v61 = vsel %vm1293_vm6, %v1291_v15, 0.0  ;;  %v1296_v34 = vadd.f32 %v1290_v51, %v1272_v14 }
 0x1a5   : > { %v1297_v7 = vadd.f32 %v1295_v61, %v1273_v42 }
 0x1a8   : > { %v1312_v1 = vpop.permute.xlu1 %1311  ;;  %v1310_v6 = vpop.permute.xlu0 %1309 }
 0x1a9   : > { %v1314_v48 = vsel %vm1313_vm7, %v1310_v6, %v1312_v1  ;;  %v1315_v9 = vsel %vm1313_vm7, %v1312_v1, %v1310_v6 }
 0x1aa   : > { %v1319_v37 = vsel %vm1317_vm8, %v1315_v9, 0.0  ;;  %v1320_v49 = vadd.f32 %v1314_v48, %v1296_v34 }
 0x1ab   : > { %v1321_v21 = vadd.f32 %v1319_v37, %v1297_v7 }
 0x1ac   : > { %v1541_v58 = vmul.f32 -1.442695, %v1320_v49 }
 0x1ad   : > { %v1542_v22 = vmul.f32 -1.442695, %v1321_v21 }
 0x1ae   : > { %1611 = vpow2.f32 %v1541_v58 }
 0x1af   : > { %1613 = vpow2.f32 %v1542_v22 }
 0x1b8   : > { %v1612_v44 = vpop.eup %1611 }
 0x1b9   : > { %v1614_v29 = vpop.eup %1613  ;;  %v1328_v27 = vadd.f32 1.0, %v1612_v44 }
 0x1ba   : > { %v1329_v52 = vadd.f32 1.0, %v1614_v29 }
 0x1bb   : > { %1615 = vrcp.f32 %v1328_v27 }
 0x1bc   : > { %1617 = vrcp.f32 %v1329_v52 }
 0x1c5   : > { %v1616_v30 = vpop.eup %1615 }
 0x1c6   : > { %v1618_v23 = vpop.eup %1617  ;;  %v1334_v31 = vadd.f32 1.0, %v1616_v30 }
 0x1c7   : > { %v1335_v25 = vadd.f32 1.0, %v1618_v23 }
 0x1c8   : > { %v1339_v13 = vrot.slane %v1334_v31, %v3271_v56 }
 0x1c9   : > { %v1343_v55 = vrot.slane %v1335_v25, %v3271_v56 }
 0x1cb   : > { %v1346_v41 = vcombine.low %v1339_v13, %v1343_v55 }
 0x1cd   : > { %v1348_v59 = vmul.f32 %v1619_v60, %v1346_v41 }
 0x1cf   : > { %1349 = vst [vmem:[%s164_s13] sm:$0xff] %v1348_v59 }
 0x1d0   : > { %1673 = shalt.err (!%p1670_p7)
}
 0x1d1   : > { %s1674_s4 = scalar_lea.hbm %s2928_s24, 128  ;;  %s1678_s14 = scalar_lea.hbm %s3319_s30, 256 }
 0x1d2   : > { %p1675_p8 = scmp.ne.s32.totalorder %s2928_s24, %s1674_s4  ;;  %p1679_p3 = scmp.lt.u32.totalorder %s2928_s24, %s3319_s30 }
 0x1d3   : > { %p1680_p4 = scmp.lt.u32.totalorder %s1678_s14, %s1674_s4  ;;  %p1682_p9 = scmp.lt.u32.totalorder %s1674_s4, %s2928_s24 }
 0x1d4   : > { %p1676_p11 = pnand %p1675_p8, %p3320_p0 }
 0x1d5   : > { %p1681_p6 = por %p1680_p4, %p1679_p3 }
 0x1d6   : > { %p1677_p12 = pneg %p1676_p11 }
 0x1d7   : > { %p1683_p1 = por %p1682_p9, %p1681_p6 }
 0x1d9   : > { %p1684_p2 = pnand %p1683_p1, %p1677_p12 }
 0x1db   : > { %1687 = shalt.err (!%p1684_p2)
}
 0x1dc   : > { %1552 = dma.vmem_to_hbm [thread:$0]  (%p3320_p0), %s2930_s27, 128, %s2928_s24, %s1351_s17  }
 0x1dd PF: > { %s3321_s18 = sld [smem:[#allocation11_spill]]  ;;  %s3322_s19 = sld [smem:[#allocation19_spill]] }
 0x1de   : > { %s3323_s11 = sld [smem:[#allocation14_spill]] }
 0x1e3   : > { %s1377_s16 = sand.u32 1, %s3321_s18   ;;  %p3324_p10 = scmp.ne.s32.totalorder %s3322_s19, 0 }
 0x1e4   : > { %p3325_p13 = scmp.ge.s32.totalorder %s3323_s11, 2  ;;  %s1378_s6 = scalar_lea.sflag [#allocation6], %s1377_s16 }
 0x1e6   : > { %p1559_p5 = pnand %p3325_p13, %p3324_p10 }
 0x1e8   : > { %1711 = dma.done.wait (!%p1559_p5), %s1378_s6, 128  }
 0x1e9   : > { %1713 = vsyncadd (!%p1559_p5), %s1378_s6, 4294967168  ;;  %s3326_s25 = sld [smem:[#allocation16_spill]]  ;;  %s3327_s22 = sld [smem:[#allocation12_spill]] }
 0x1ea   : > { %s3328_s23 = sld [smem:[#allocation13_spill]]  ;;  %s3329_s24 = sld [smem:[#allocation17_spill]] }
 0x1ef   : > { %p20_p7 = scmp.ge.s32.totalorder %s3326_s25, 4  }
 0x1f1   :  { %22 = sbr.rel (!%p20_p7) target bundleno = 18 (0x12), region = 73 }
 0x1f8   :  { %1383 = vsyncpa [#allocation5], 1 }
 0x1f9   :  { %1385 = vsyncpa [#allocation5 + $0x1], 1 }
 0x1fa   :  { %1386 = vsyncpa [#allocation6], 1 }
 0x1fb   :  { %1388 = vsyncpa [#allocation6 + $0x1], 1 }

</bundles_post_ra>
